<compile_context>
chip_gen: v6e
topology: v6e:2x2x1
jax: 0.10.0
libtpu: 0.0.40
codegen_flags: <defaults>
</compile_context>

<pallas_src>
import functools

import numpy as np

import jax
import jax.numpy as jnp
from jax.experimental import pallas as pl
from jax.experimental.pallas import tpu as pltpu


# ----------------------------------------------------------------------------
# Host-side constants (cached)
# ----------------------------------------------------------------------------
@functools.lru_cache(maxsize=None)
def _tap_masks(H, W, n_img):
    """(9, n_img*H*W) float32 validity mask per 3x3 tap, image-major lanes."""
    pos = np.arange(H * W)
    hh, ww = pos // W, pos % W
    rows = []
    for dy in (-1, 0, 1):
        for dx in (-1, 0, 1):
            valid = ((hh + dy >= 0) & (hh + dy < H) &
                     (ww + dx >= 0) & (ww + dx < W))
            rows.append(valid.astype(np.float32))
    m = np.stack(rows, axis=0)          # (9, HW)
    m = np.tile(m, (1, n_img))          # (9, n_img*HW), repeats per image
    return jnp.asarray(m)


def _pack_conv_weight(w_hwio, c_in_pad=None):
    """HWIO (3,3,Ci,Co) -> (Co, 9*Ci_pad); rows ordered tap-major,
    channel-minor (matching the im2col patch layout); optional zero-pad of
    input channels."""
    kh, kw, ci, co = w_hwio.shape
    if c_in_pad is not None and c_in_pad > ci:
        w_hwio = jnp.pad(w_hwio, ((0, 0), (0, 0), (0, c_in_pad - ci), (0, 0)))
        ci = c_in_pad
    return jnp.transpose(w_hwio, (3, 0, 1, 2)).reshape(co, kh * kw * ci)


# ----------------------------------------------------------------------------
# Fused student+teacher two-conv kernel (one grid step per image group)
# ----------------------------------------------------------------------------
def _fused_two_net_kernel(x_ref, mask_ref, w1_ref, b1_ref, w2_ref, b2_ref,
                          mid_ref, out_ref, patch1_ref, patch2_ref,
                          *, shifts):
    """Lane-dense layout: every activation is (C, L) with L = n_img*H*W.

    x_ref   : (C_pad, L)        input (channels zero-padded to 8k)
    mask_ref: (9, L)            per-tap validity masks (0/1 float32)
    w1_ref  : (C_mid, 9*C_pad)  packed conv1 weights (student ++ teacher)
    b1_ref  : (C_mid, 1)
    w2_ref  : (2*C_out, 9*C_mid) block-diagonal packed conv2 weights
    b2_ref  : (2*C_out, 1)
    mid_ref : (C_mid, L)        out_ref: (2*C_out, L)
    patch*_ref: VMEM scratch for the im2col patch matrices
    shifts  : static tuple of 9 pltpu.roll lane shifts (one per 3x3 tap)
    """
    masks = mask_ref[...]                                   # (9, L)

    def im2col(a, patch_ref):
        """(C, L) -> patch_ref (9*C, L): XLU lane rolls + VPU mask-multiply,
        each tap written straight into its sublane slice of the scratch."""
        c = a.shape[0]
        for t, shift in enumerate(shifts):
            if shift == 0:                                  # center tap
                patch_ref[pl.ds(t * c, c), :] = a
            else:
                patch_ref[pl.ds(t * c, c), :] = (
                    pltpu.roll(a, shift, 1) * masks[t:t + 1, :])
        return patch_ref[...]

    # conv1 (student + teacher fused): one MXU contraction.
    p1 = im2col(x_ref[...], patch1_ref)                     # (9*C_pad, L)
    mid = jnp.dot(w1_ref[...], p1, preferred_element_type=jnp.float32)
    mid = jnp.maximum(mid + b1_ref[...], 0.0)               # bias + ReLU
    mid_ref[...] = mid.astype(mid_ref.dtype)

    # conv2 (block-diagonal student+teacher): one MXU contraction.
    p2 = im2col(mid, patch2_ref)                            # (9*C_mid, L)
    out = jnp.dot(w2_ref[...], p2,
                  preferred_element_type=jnp.float32) + b2_ref[...]
    out_ref[...] = out.astype(out_ref.dtype)


# ----------------------------------------------------------------------------
# Jitted forward: layout plumbing + one pallas_call
# ----------------------------------------------------------------------------
@functools.partial(jax.jit,
                   static_argnames=("C_pad", "C_stu", "C_out", "num_groups"))
def _forward_impl(x_nchw, masks, w1_all, b1_all, w2_all, b2_all, *,
                  C_pad, C_stu, C_out, num_groups):
    N, C_in, H, W = x_nchw.shape
    HW = H * W
    G = num_groups
    n_img = N // G
    L = n_img * HW                       # lanes per grid step
    C_mid = w1_all.shape[0]              # C_stu + C_tea
    C_out2 = w2_all.shape[0]             # 2 * C_out
    dt = x_nchw.dtype

    # NCHW -> lane-dense (C_pad, N*HW), image-major lanes.
    x = x_nchw.reshape(N, C_in, HW)
    if C_pad != C_in:
        x = jnp.pad(x, ((0, 0), (0, C_pad - C_in), (0, 0)))
    x_lanes = jnp.transpose(x, (1, 0, 2)).reshape(C_pad, N * HW)

    # pltpu.roll follows jnp.roll: out[p] = a[p - shift]  =>  shift = -step.
    shifts = tuple((-(dy * W + dx)) % L
                   for dy in (-1, 0, 1) for dx in (-1, 0, 1))

    kernel = functools.partial(_fused_two_net_kernel, shifts=shifts)

    # NOTE(v7x): per-step VMEM here is <1 MiB; if images/channels are scaled
    # up, tile HW in multiples of 128 and re-budget against 64 MiB VMEM.
    mid_l, out_l = pl.pallas_call(
        kernel,
        out_shape=(jax.ShapeDtypeStruct((C_mid, N * HW), dt),
                   jax.ShapeDtypeStruct((C_out2, N * HW), dt)),
        grid_spec=pltpu.PrefetchScalarGridSpec(
            num_scalar_prefetch=0,
            grid=(G,),
            in_specs=[
                pl.BlockSpec((C_pad, L), lambda g: (0, g)),
                pl.BlockSpec((9, L), lambda g: (0, 0)),
                pl.BlockSpec((C_mid, w1_all.shape[1]), lambda g: (0, 0)),
                pl.BlockSpec((C_mid, 1), lambda g: (0, 0)),
                pl.BlockSpec((C_out2, w2_all.shape[1]), lambda g: (0, 0)),
                pl.BlockSpec((C_out2, 1), lambda g: (0, 0)),
            ],
            out_specs=[
                pl.BlockSpec((C_mid, L), lambda g: (0, g)),
                pl.BlockSpec((C_out2, L), lambda g: (0, g)),
            ],
            scratch_shapes=[
                pltpu.VMEM((9 * C_pad, L), jnp.float32),   # conv1 patches
                pltpu.VMEM((9 * C_mid, L), jnp.float32),   # conv2 patches
            ],
        ),
        compiler_params=pltpu.CompilerParams(
            dimension_semantics=("parallel",)),
    )(x_lanes, masks, w1_all, b1_all, w2_all, b2_all)

    # lane-dense (C, N*HW) -> NCHW (tiny transpose, fused in this jit).
    def to_nchw(a):
        c = a.shape[0]
        return jnp.transpose(a.reshape(c, N, HW), (1, 0, 2)).reshape(N, c, H, W)

    mid = to_nchw(mid_l)
    out = to_nchw(out_l)
    y_stu = {'mid': mid[:, :C_stu], 'out': out[:, :C_out]}
    y_tea = {'mid': mid[:, C_stu:], 'out': out[:, C_out:]}
    return y_stu, y_tea


# ----------------------------------------------------------------------------
# Trainer (forward pass only; training-time pieces are host logic)
# ----------------------------------------------------------------------------
def _init_net_params(key, c_in, c_mid, c_out):
    """Deterministic Conv->ReLU->Conv parameter init (HWIO weights)."""
    k1, k2 = jax.random.split(key)
    w1 = jax.random.normal(k1, (3, 3, c_in, c_mid), jnp.float32) * 0.1
    b1 = jnp.linspace(-0.05, 0.05, c_mid).astype(jnp.float32)
    w2 = jax.random.normal(k2, (3, 3, c_mid, c_out), jnp.float32) * 0.1
    b2 = jnp.linspace(-0.05, 0.05, c_out).astype(jnp.float32)
    return w1, b1, w2, b2


class Trainer:
    """JAX/Pallas equivalent of Trainer.forward: runs student and teacher."""
    # TODO(synk): Adam optimizer / scheduler / L1 + pairwise losses /
    #             checkpoint save-load are host-side training logic.

    def __init__(self, key, c_in=4, c_stu=8, c_tea=16, c_out=4, num_groups=1):
        k_stu, k_tea = jax.random.split(key)
        self.stu_params = _init_net_params(k_stu, c_in, c_stu, c_out)
        self.tea_params = _init_net_params(k_tea, c_in, c_tea, c_out)
        self.c_in, self.c_stu, self.c_tea, self.c_out = c_in, c_stu, c_tea, c_out
        # num_groups: 1 = whole batch in one grid step; set 2 on v7x (2 TCs).
        self.num_groups = num_groups
        self.c_pad = max(8, ((c_in + 7) // 8) * 8)

        # ---- pack weights ONCE (hoisted out of forward) ------------------
        w1s, b1s, w2s, b2s = self.stu_params
        w1t, b1t, w2t, b2t = self.tea_params
        c_mid = c_stu + c_tea
        # conv1: student ++ teacher output channels -> one matmul.
        self.w1_all = jnp.concatenate(
            [_pack_conv_weight(w1s, self.c_pad),
             _pack_conv_weight(w1t, self.c_pad)], axis=0)
        self.b1_all = jnp.concatenate([b1s, b1t]).reshape(c_mid, 1)
        # conv2: block-diagonal over (student | teacher) channels -> one matmul.
        w2_blk = jnp.zeros((3, 3, c_mid, 2 * c_out), jnp.float32)
        w2_blk = w2_blk.at[:, :, :c_stu, :c_out].set(w2s)
        w2_blk = w2_blk.at[:, :, c_stu:, c_out:].set(w2t)
        self.w2_all = _pack_conv_weight(w2_blk)
        self.b2_all = jnp.concatenate([b2s, b2t]).reshape(2 * c_out, 1)

    def forward(self, x_nchw):
        N, _, H, W = x_nchw.shape
        g = self.num_groups if (self.num_groups >= 1 and
                                N % self.num_groups == 0) else 1
        masks = _tap_masks(H, W, N // g)
        return _forward_impl(
            x_nchw, masks, self.w1_all, self.b1_all, self.w2_all, self.b2_all,
            C_pad=self.c_pad, C_stu=self.c_stu, C_out=self.c_out,
            num_groups=g)


# ----------------------------------------------------------------------------
# Plain-JAX reference for correctness checking
# ----------------------------------------------------------------------------
def _reference_two_conv(x_nchw, w1, b1, w2, b2):
    def conv(x, w, b):  # w is HWIO
        y = jax.lax.conv_general_dilated(
            x, w, window_strides=(1, 1), padding='SAME',
            dimension_numbers=('NCHW', 'HWIO', 'NCHW'))
        return y + b.reshape(1, -1, 1, 1)
    mid = jnp.maximum(conv(x_nchw, w1, b1), 0.0)
    out = conv(mid, w2, b2)
    return {'mid': mid, 'out': out}


if __name__ == "__main__":
    key = jax.random.PRNGKey(0)
    k_x, k_params = jax.random.split(key)

    # Small image-like input, PyTorch NCHW convention.
    x = jax.random.normal(k_x, (2, 4, 16, 16), jnp.float32)

    trainer = Trainer(k_params, c_in=4, c_stu=8, c_tea=16, c_out=4)

    y_stu, y_tea = trainer.forward(x)
    jax.block_until_ready((y_stu['mid'], y_stu['out'],
                           y_tea['mid'], y_tea['out']))

    # Sanity check against a plain-JAX reference.
    ref_stu = _reference_two_conv(x, *trainer.stu_params)
    ref_tea = _reference_two_conv(x, *trainer.tea_params)
    for got, ref in ((y_stu, ref_stu), (y_tea, ref_tea)):
        for name in ('mid', 'out'):
            assert got[name].shape == ref[name].shape
            assert float(jnp.max(jnp.abs(got[name] - ref[name]))) < 1e-3

    print("KERNEL_OK")
</pallas_src>

<mosaic_0001>
module attributes {stable_mosaic.version = 11 : i64} {
  func.func @_fused_two_net_kernel(%arg0: i32, %arg1: memref<8x512xf32, #tpu.memory_space<vmem>>, %arg2: memref<9x512xf32, #tpu.memory_space<vmem>>, %arg3: memref<24x72xf32, #tpu.memory_space<vmem>>, %arg4: memref<24x1xf32, #tpu.memory_space<vmem>>, %arg5: memref<8x216xf32, #tpu.memory_space<vmem>>, %arg6: memref<8x1xf32, #tpu.memory_space<vmem>>, %arg7: memref<24x512xf32, #tpu.memory_space<vmem>>, %arg8: memref<8x512xf32, #tpu.memory_space<vmem>>, %arg9: memref<72x512xf32, #tpu.memory_space<vmem>>, %arg10: memref<216x512xf32, #tpu.memory_space<vmem>>) attributes {dimension_semantics = [#tpu.dimension_semantics<parallel>], iteration_bounds = array<i64: 1>, scalar_prefetch = 0 : i64, scratch_operands = 2 : i64, tpu.core_type = #tpu.core_type<tc>, window_params = [{transform_indices = @transform_0, window_bounds = array<i64: 8, 512>}, {pipeline_mode = #tpu.pipeline_mode<synchronous>, transform_indices = @transform_1, window_bounds = array<i64: 9, 512>}, {pipeline_mode = #tpu.pipeline_mode<synchronous>, transform_indices = @transform_2, window_bounds = array<i64: 24, 72>}, {pipeline_mode = #tpu.pipeline_mode<synchronous>, transform_indices = @transform_3, window_bounds = array<i64: 24, 1>}, {pipeline_mode = #tpu.pipeline_mode<synchronous>, transform_indices = @transform_4, window_bounds = array<i64: 8, 216>}, {pipeline_mode = #tpu.pipeline_mode<synchronous>, transform_indices = @transform_5, window_bounds = array<i64: 8, 1>}, {transform_indices = @transform_6, window_bounds = array<i64: 24, 512>}, {transform_indices = @transform_7, window_bounds = array<i64: 8, 512>}]} {
    %c0 = arith.constant 0 : index
    %c0_0 = arith.constant 0 : index
    %0 = vector.load %arg2[%c0, %c0_0] : memref<9x512xf32, #tpu.memory_space<vmem>>, vector<9x512xf32>
    %c0_1 = arith.constant 0 : index
    %c0_2 = arith.constant 0 : index
    %1 = vector.load %arg1[%c0_1, %c0_2] : memref<8x512xf32, #tpu.memory_space<vmem>>, vector<8x512xf32>
    %c17_i32 = arith.constant 17 : i32
    %2 = tpu.dynamic_rotate %1 by %c17_i32 dim 1 : vector<8x512xf32>, i32 -> vector<8x512xf32>
    %3 = vector.extract_strided_slice %0 {offsets = [0, 0], sizes = [1, 512], strides = [1, 1]} : vector<9x512xf32> to vector<1x512xf32>
    %4 = vector.broadcast %3 : vector<1x512xf32> to vector<8x512xf32>
    %5 = arith.mulf %2, %4 : vector<8x512xf32>
    %c0_3 = arith.constant 0 : index
    %c0_4 = arith.constant 0 : index
    %6 = vector.load %arg9[%c0_3, %c0_4] : memref<72x512xf32, #tpu.memory_space<vmem>>, vector<8x512xf32>
    tpu.vector_store %arg9[%c0_3, %c0_4], %5 {strides = array<i32>} : memref<72x512xf32, #tpu.memory_space<vmem>>, vector<8x512xf32>,
    %c16_i32 = arith.constant 16 : i32
    %7 = tpu.dynamic_rotate %1 by %c16_i32 dim 1 : vector<8x512xf32>, i32 -> vector<8x512xf32>
    %8 = vector.extract_strided_slice %0 {offsets = [1, 0], sizes = [1, 512], strides = [1, 1]} : vector<9x512xf32> to vector<1x512xf32>
    %9 = vector.broadcast %8 : vector<1x512xf32> to vector<8x512xf32>
    %10 = arith.mulf %7, %9 : vector<8x512xf32>
    %c8 = arith.constant 8 : index
    %c0_5 = arith.constant 0 : index
    %11 = vector.load %arg9[%c8, %c0_5] : memref<72x512xf32, #tpu.memory_space<vmem>>, vector<8x512xf32>
    tpu.vector_store %arg9[%c8, %c0_5], %10 {strides = array<i32>} : memref<72x512xf32, #tpu.memory_space<vmem>>, vector<8x512xf32>,
    %c15_i32 = arith.constant 15 : i32
    %12 = tpu.dynamic_rotate %1 by %c15_i32 dim 1 : vector<8x512xf32>, i32 -> vector<8x512xf32>
    %13 = vector.extract_strided_slice %0 {offsets = [2, 0], sizes = [1, 512], strides = [1, 1]} : vector<9x512xf32> to vector<1x512xf32>
    %14 = vector.broadcast %13 : vector<1x512xf32> to vector<8x512xf32>
    %15 = arith.mulf %12, %14 : vector<8x512xf32>
    %c16 = arith.constant 16 : index
    %c0_6 = arith.constant 0 : index
    %16 = vector.load %arg9[%c16, %c0_6] : memref<72x512xf32, #tpu.memory_space<vmem>>, vector<8x512xf32>
    tpu.vector_store %arg9[%c16, %c0_6], %15 {strides = array<i32>} : memref<72x512xf32, #tpu.memory_space<vmem>>, vector<8x512xf32>,
    %c1_i32 = arith.constant 1 : i32
    %17 = tpu.dynamic_rotate %1 by %c1_i32 dim 1 : vector<8x512xf32>, i32 -> vector<8x512xf32>
    %18 = vector.extract_strided_slice %0 {offsets = [3, 0], sizes = [1, 512], strides = [1, 1]} : vector<9x512xf32> to vector<1x512xf32>
    %19 = vector.broadcast %18 : vector<1x512xf32> to vector<8x512xf32>
    %20 = arith.mulf %17, %19 : vector<8x512xf32>
    %c24 = arith.constant 24 : index
    %c0_7 = arith.constant 0 : index
    %21 = vector.load %arg9[%c24, %c0_7] : memref<72x512xf32, #tpu.memory_space<vmem>>, vector<8x512xf32>
    tpu.vector_store %arg9[%c24, %c0_7], %20 {strides = array<i32>} : memref<72x512xf32, #tpu.memory_space<vmem>>, vector<8x512xf32>,
    %c32 = arith.constant 32 : index
    %c0_8 = arith.constant 0 : index
    %22 = vector.load %arg9[%c32, %c0_8] : memref<72x512xf32, #tpu.memory_space<vmem>>, vector<8x512xf32>
    tpu.vector_store %arg9[%c32, %c0_8], %1 {strides = array<i32>} : memref<72x512xf32, #tpu.memory_space<vmem>>, vector<8x512xf32>,
    %c511_i32 = arith.constant 511 : i32
    %23 = tpu.dynamic_rotate %1 by %c511_i32 dim 1 : vector<8x512xf32>, i32 -> vector<8x512xf32>
    %24 = vector.extract_strided_slice %0 {offsets = [5, 0], sizes = [1, 512], strides = [1, 1]} : vector<9x512xf32> to vector<1x512xf32>
    %25 = vector.broadcast %24 : vector<1x512xf32> to vector<8x512xf32>
    %26 = arith.mulf %23, %25 : vector<8x512xf32>
    %c40 = arith.constant 40 : index
    %c0_9 = arith.constant 0 : index
    %27 = vector.load %arg9[%c40, %c0_9] : memref<72x512xf32, #tpu.memory_space<vmem>>, vector<8x512xf32>
    tpu.vector_store %arg9[%c40, %c0_9], %26 {strides = array<i32>} : memref<72x512xf32, #tpu.memory_space<vmem>>, vector<8x512xf32>,
    %c497_i32 = arith.constant 497 : i32
    %28 = tpu.dynamic_rotate %1 by %c497_i32 dim 1 : vector<8x512xf32>, i32 -> vector<8x512xf32>
    %29 = vector.extract_strided_slice %0 {offsets = [6, 0], sizes = [1, 512], strides = [1, 1]} : vector<9x512xf32> to vector<1x512xf32>
    %30 = vector.broadcast %29 : vector<1x512xf32> to vector<8x512xf32>
    %31 = arith.mulf %28, %30 : vector<8x512xf32>
    %c48 = arith.constant 48 : index
    %c0_10 = arith.constant 0 : index
    %32 = vector.load %arg9[%c48, %c0_10] : memref<72x512xf32, #tpu.memory_space<vmem>>, vector<8x512xf32>
    tpu.vector_store %arg9[%c48, %c0_10], %31 {strides = array<i32>} : memref<72x512xf32, #tpu.memory_space<vmem>>, vector<8x512xf32>,
    %c496_i32 = arith.constant 496 : i32
    %33 = tpu.dynamic_rotate %1 by %c496_i32 dim 1 : vector<8x512xf32>, i32 -> vector<8x512xf32>
    %34 = vector.extract_strided_slice %0 {offsets = [7, 0], sizes = [1, 512], strides = [1, 1]} : vector<9x512xf32> to vector<1x512xf32>
    %35 = vector.broadcast %34 : vector<1x512xf32> to vector<8x512xf32>
    %36 = arith.mulf %33, %35 : vector<8x512xf32>
    %c56 = arith.constant 56 : index
    %c0_11 = arith.constant 0 : index
    %37 = vector.load %arg9[%c56, %c0_11] : memref<72x512xf32, #tpu.memory_space<vmem>>, vector<8x512xf32>
    tpu.vector_store %arg9[%c56, %c0_11], %36 {strides = array<i32>} : memref<72x512xf32, #tpu.memory_space<vmem>>, vector<8x512xf32>,
    %c495_i32 = arith.constant 495 : i32
    %38 = tpu.dynamic_rotate %1 by %c495_i32 dim 1 : vector<8x512xf32>, i32 -> vector<8x512xf32>
    %39 = vector.extract_strided_slice %0 {offsets = [8, 0], sizes = [1, 512], strides = [1, 1]} : vector<9x512xf32> to vector<1x512xf32>
    %40 = vector.broadcast %39 : vector<1x512xf32> to vector<8x512xf32>
    %41 = arith.mulf %38, %40 : vector<8x512xf32>
    %c64 = arith.constant 64 : index
    %c0_12 = arith.constant 0 : index
    %42 = vector.load %arg9[%c64, %c0_12] : memref<72x512xf32, #tpu.memory_space<vmem>>, vector<8x512xf32>
    tpu.vector_store %arg9[%c64, %c0_12], %41 {strides = array<i32>} : memref<72x512xf32, #tpu.memory_space<vmem>>, vector<8x512xf32>,
    %c0_13 = arith.constant 0 : index
    %c0_14 = arith.constant 0 : index
    %43 = vector.load %arg9[%c0_13, %c0_14] : memref<72x512xf32, #tpu.memory_space<vmem>>, vector<72x512xf32>
    %c0_15 = arith.constant 0 : index
    %c0_16 = arith.constant 0 : index
    %44 = vector.load %arg3[%c0_15, %c0_16] : memref<24x72xf32, #tpu.memory_space<vmem>>, vector<24x72xf32>
    %cst = arith.constant dense<0.000000e+00> : vector<24x512xf32>
    %45 = tpu.matmul %44, %43, %cst {dimension_numbers = #tpu.dot_dimension_numbers<[1], [0], [0], [1], [0, 0, 1, 1], [], []>} : vector<24x72xf32>, vector<72x512xf32>, vector<24x512xf32> -> vector<24x512xf32>
    %c0_17 = arith.constant 0 : index
    %c0_18 = arith.constant 0 : index
    %46 = vector.load %arg4[%c0_17, %c0_18] : memref<24x1xf32, #tpu.memory_space<vmem>>, vector<24x1xf32>
    %47 = vector.broadcast %46 : vector<24x1xf32> to vector<24x512xf32>
    %48 = arith.addf %45, %47 : vector<24x512xf32>
    %cst_19 = arith.constant 0.000000e+00 : f32
    %49 = vector.broadcast %cst_19 : f32 to vector<24x512xf32>
    %50 = arith.maximumf %48, %49 : vector<24x512xf32>
    %c0_20 = arith.constant 0 : index
    %c0_21 = arith.constant 0 : index
    %51 = vector.load %arg7[%c0_20, %c0_21] : memref<24x512xf32, #tpu.memory_space<vmem>>, vector<24x512xf32>
    tpu.vector_store %arg7[%c0_20, %c0_21], %50 {strides = array<i32>} : memref<24x512xf32, #tpu.memory_space<vmem>>, vector<24x512xf32>,
    %c17_i32_22 = arith.constant 17 : i32
    %52 = tpu.dynamic_rotate %50 by %c17_i32_22 dim 1 : vector<24x512xf32>, i32 -> vector<24x512xf32>
    %53 = vector.extract_strided_slice %0 {offsets = [0, 0], sizes = [1, 512], strides = [1, 1]} : vector<9x512xf32> to vector<1x512xf32>
    %54 = vector.broadcast %53 : vector<1x512xf32> to vector<24x512xf32>
    %55 = arith.mulf %52, %54 : vector<24x512xf32>
    %c0_23 = arith.constant 0 : index
    %c0_24 = arith.constant 0 : index
    %56 = vector.load %arg10[%c0_23, %c0_24] : memref<216x512xf32, #tpu.memory_space<vmem>>, vector<24x512xf32>
    tpu.vector_store %arg10[%c0_23, %c0_24], %55 {strides = array<i32>} : memref<216x512xf32, #tpu.memory_space<vmem>>, vector<24x512xf32>,
    %c16_i32_25 = arith.constant 16 : i32
    %57 = tpu.dynamic_rotate %50 by %c16_i32_25 dim 1 : vector<24x512xf32>, i32 -> vector<24x512xf32>
    %58 = vector.extract_strided_slice %0 {offsets = [1, 0], sizes = [1, 512], strides = [1, 1]} : vector<9x512xf32> to vector<1x512xf32>
    %59 = vector.broadcast %58 : vector<1x512xf32> to vector<24x512xf32>
    %60 = arith.mulf %57, %59 : vector<24x512xf32>
    %c24_26 = arith.constant 24 : index
    %c0_27 = arith.constant 0 : index
    %61 = vector.load %arg10[%c24_26, %c0_27] : memref<216x512xf32, #tpu.memory_space<vmem>>, vector<24x512xf32>
    tpu.vector_store %arg10[%c24_26, %c0_27], %60 {strides = array<i32>} : memref<216x512xf32, #tpu.memory_space<vmem>>, vector<24x512xf32>,
    %c15_i32_28 = arith.constant 15 : i32
    %62 = tpu.dynamic_rotate %50 by %c15_i32_28 dim 1 : vector<24x512xf32>, i32 -> vector<24x512xf32>
    %63 = vector.extract_strided_slice %0 {offsets = [2, 0], sizes = [1, 512], strides = [1, 1]} : vector<9x512xf32> to vector<1x512xf32>
    %64 = vector.broadcast %63 : vector<1x512xf32> to vector<24x512xf32>
    %65 = arith.mulf %62, %64 : vector<24x512xf32>
    %c48_29 = arith.constant 48 : index
    %c0_30 = arith.constant 0 : index
    %66 = vector.load %arg10[%c48_29, %c0_30] : memref<216x512xf32, #tpu.memory_space<vmem>>, vector<24x512xf32>
    tpu.vector_store %arg10[%c48_29, %c0_30], %65 {strides = array<i32>} : memref<216x512xf32, #tpu.memory_space<vmem>>, vector<24x512xf32>,
    %c1_i32_31 = arith.constant 1 : i32
    %67 = tpu.dynamic_rotate %50 by %c1_i32_31 dim 1 : vector<24x512xf32>, i32 -> vector<24x512xf32>
    %68 = vector.extract_strided_slice %0 {offsets = [3, 0], sizes = [1, 512], strides = [1, 1]} : vector<9x512xf32> to vector<1x512xf32>
    %69 = vector.broadcast %68 : vector<1x512xf32> to vector<24x512xf32>
    %70 = arith.mulf %67, %69 : vector<24x512xf32>
    %c72 = arith.constant 72 : index
    %c0_32 = arith.constant 0 : index
    %71 = vector.load %arg10[%c72, %c0_32] : memref<216x512xf32, #tpu.memory_space<vmem>>, vector<24x512xf32>
    tpu.vector_store %arg10[%c72, %c0_32], %70 {strides = array<i32>} : memref<216x512xf32, #tpu.memory_space<vmem>>, vector<24x512xf32>,
    %c96 = arith.constant 96 : index
    %c0_33 = arith.constant 0 : index
    %72 = vector.load %arg10[%c96, %c0_33] : memref<216x512xf32, #tpu.memory_space<vmem>>, vector<24x512xf32>
    tpu.vector_store %arg10[%c96, %c0_33], %50 {strides = array<i32>} : memref<216x512xf32, #tpu.memory_space<vmem>>, vector<24x512xf32>,
    %c511_i32_34 = arith.constant 511 : i32
    %73 = tpu.dynamic_rotate %50 by %c511_i32_34 dim 1 : vector<24x512xf32>, i32 -> vector<24x512xf32>
    %74 = vector.extract_strided_slice %0 {offsets = [5, 0], sizes = [1, 512], strides = [1, 1]} : vector<9x512xf32> to vector<1x512xf32>
    %75 = vector.broadcast %74 : vector<1x512xf32> to vector<24x512xf32>
    %76 = arith.mulf %73, %75 : vector<24x512xf32>
    %c120 = arith.constant 120 : index
    %c0_35 = arith.constant 0 : index
    %77 = vector.load %arg10[%c120, %c0_35] : memref<216x512xf32, #tpu.memory_space<vmem>>, vector<24x512xf32>
    tpu.vector_store %arg10[%c120, %c0_35], %76 {strides = array<i32>} : memref<216x512xf32, #tpu.memory_space<vmem>>, vector<24x512xf32>,
    %c497_i32_36 = arith.constant 497 : i32
    %78 = tpu.dynamic_rotate %50 by %c497_i32_36 dim 1 : vector<24x512xf32>, i32 -> vector<24x512xf32>
    %79 = vector.extract_strided_slice %0 {offsets = [6, 0], sizes = [1, 512], strides = [1, 1]} : vector<9x512xf32> to vector<1x512xf32>
    %80 = vector.broadcast %79 : vector<1x512xf32> to vector<24x512xf32>
    %81 = arith.mulf %78, %80 : vector<24x512xf32>
    %c144 = arith.constant 144 : index
    %c0_37 = arith.constant 0 : index
    %82 = vector.load %arg10[%c144, %c0_37] : memref<216x512xf32, #tpu.memory_space<vmem>>, vector<24x512xf32>
    tpu.vector_store %arg10[%c144, %c0_37], %81 {strides = array<i32>} : memref<216x512xf32, #tpu.memory_space<vmem>>, vector<24x512xf32>,
    %c496_i32_38 = arith.constant 496 : i32
    %83 = tpu.dynamic_rotate %50 by %c496_i32_38 dim 1 : vector<24x512xf32>, i32 -> vector<24x512xf32>
    %84 = vector.extract_strided_slice %0 {offsets = [7, 0], sizes = [1, 512], strides = [1, 1]} : vector<9x512xf32> to vector<1x512xf32>
    %85 = vector.broadcast %84 : vector<1x512xf32> to vector<24x512xf32>
    %86 = arith.mulf %83, %85 : vector<24x512xf32>
    %c168 = arith.constant 168 : index
    %c0_39 = arith.constant 0 : index
    %87 = vector.load %arg10[%c168, %c0_39] : memref<216x512xf32, #tpu.memory_space<vmem>>, vector<24x512xf32>
    tpu.vector_store %arg10[%c168, %c0_39], %86 {strides = array<i32>} : memref<216x512xf32, #tpu.memory_space<vmem>>, vector<24x512xf32>,
    %c495_i32_40 = arith.constant 495 : i32
    %88 = tpu.dynamic_rotate %50 by %c495_i32_40 dim 1 : vector<24x512xf32>, i32 -> vector<24x512xf32>
    %89 = vector.extract_strided_slice %0 {offsets = [8, 0], sizes = [1, 512], strides = [1, 1]} : vector<9x512xf32> to vector<1x512xf32>
    %90 = vector.broadcast %89 : vector<1x512xf32> to vector<24x512xf32>
    %91 = arith.mulf %88, %90 : vector<24x512xf32>
    %c192 = arith.constant 192 : index
    %c0_41 = arith.constant 0 : index
    %92 = vector.load %arg10[%c192, %c0_41] : memref<216x512xf32, #tpu.memory_space<vmem>>, vector<24x512xf32>
    tpu.vector_store %arg10[%c192, %c0_41], %91 {strides = array<i32>} : memref<216x512xf32, #tpu.memory_space<vmem>>, vector<24x512xf32>,
    %c0_42 = arith.constant 0 : index
    %c0_43 = arith.constant 0 : index
    %93 = vector.load %arg10[%c0_42, %c0_43] : memref<216x512xf32, #tpu.memory_space<vmem>>, vector<216x512xf32>
    %c0_44 = arith.constant 0 : index
    %c0_45 = arith.constant 0 : index
    %94 = vector.load %arg5[%c0_44, %c0_45] : memref<8x216xf32, #tpu.memory_space<vmem>>, vector<8x216xf32>
    %cst_46 = arith.constant dense<0.000000e+00> : vector<8x512xf32>
    %95 = tpu.matmul %94, %93, %cst_46 {dimension_numbers = #tpu.dot_dimension_numbers<[1], [0], [0], [1], [0, 0, 1, 1], [], []>} : vector<8x216xf32>, vector<216x512xf32>, vector<8x512xf32> -> vector<8x512xf32>
    %c0_47 = arith.constant 0 : index
    %c0_48 = arith.constant 0 : index
    %96 = vector.load %arg6[%c0_47, %c0_48] : memref<8x1xf32, #tpu.memory_space<vmem>>, vector<8x1xf32>
    %97 = vector.broadcast %96 : vector<8x1xf32> to vector<8x512xf32>
    %98 = arith.addf %95, %97 : vector<8x512xf32>
    %c0_49 = arith.constant 0 : index
    %c0_50 = arith.constant 0 : index
    %99 = vector.load %arg8[%c0_49, %c0_50] : memref<8x512xf32, #tpu.memory_space<vmem>>, vector<8x512xf32>
    tpu.vector_store %arg8[%c0_49, %c0_50], %98 {strides = array<i32>} : memref<8x512xf32, #tpu.memory_space<vmem>>, vector<8x512xf32>,
    return
  }
  func.func @transform_0(%arg0: i32) -> (i32, i32) {
    %c0_i32 = arith.constant 0 : i32
    %c0_i32_0 = arith.constant 0 : i32
    return %c0_i32, %arg0 : i32, i32
  }
  func.func @transform_1(%arg0: i32) -> (i32, i32) {
    %c0_i32 = arith.constant 0 : i32
    %c0_i32_0 = arith.constant 0 : i32
    %c0_i32_1 = arith.constant 0 : i32
    return %c0_i32, %c0_i32_0 : i32, i32
  }
  func.func @transform_2(%arg0: i32) -> (i32, i32) {
    %c0_i32 = arith.constant 0 : i32
    %c0_i32_0 = arith.constant 0 : i32
    %c0_i32_1 = arith.constant 0 : i32
    return %c0_i32, %c0_i32_0 : i32, i32
  }
  func.func @transform_3(%arg0: i32) -> (i32, i32) {
    %c0_i32 = arith.constant 0 : i32
    %c0_i32_0 = arith.constant 0 : i32
    %c0_i32_1 = arith.constant 0 : i32
    return %c0_i32, %c0_i32_0 : i32, i32
  }
  func.func @transform_4(%arg0: i32) -> (i32, i32) {
    %c0_i32 = arith.constant 0 : i32
    %c0_i32_0 = arith.constant 0 : i32
    %c0_i32_1 = arith.constant 0 : i32
    return %c0_i32, %c0_i32_0 : i32, i32
  }
  func.func @transform_5(%arg0: i32) -> (i32, i32) {
    %c0_i32 = arith.constant 0 : i32
    %c0_i32_0 = arith.constant 0 : i32
    %c0_i32_1 = arith.constant 0 : i32
    return %c0_i32, %c0_i32_0 : i32, i32
  }
  func.func @transform_6(%arg0: i32) -> (i32, i32) {
    %c0_i32 = arith.constant 0 : i32
    %c0_i32_0 = arith.constant 0 : i32
    return %c0_i32, %arg0 : i32, i32
  }
  func.func @transform_7(%arg0: i32) -> (i32, i32) {
    %c0_i32 = arith.constant 0 : i32
    %c0_i32_0 = arith.constant 0 : i32
    return %c0_i32, %arg0 : i32, i32
  }
}

</mosaic_0001>

<bundles_post_ra>
// kernel: _forward_impl.1
= control target key start
LH: loop header
LB: loop body
LE: loop exit
PB: predicated region body
PF: predicated region fallthrough
CT: control target
= control target key end

     0   :  { %s1390_s28 = smov 111   ;;  %s1391_s10 = smov 112   ;;  %v1397_v4 = vmov 0.0   ;;  %v1399_v5 = vmov 0   ;;  %v45_v9 = vlaneseq  ;;  %vm396_vm8 = vcmask 588800   ;;  %s2592_s0 = inlined_call_operand.vmem [shape: f32[8,512], index: 0, kind: input, shape index: {}]   ;;  %s2593_s3 = inlined_call_operand.vmem [shape: f32[24,1], index: 3, kind: input, shape index: {}]   ;;  %s2594_s1 = inlined_call_operand.vmem [shape: f32[9,512], index: 1, kind: input, shape index: {}]   ;;  %s2595_s2 = inlined_call_operand.vmem [shape: f32[24,72], index: 2, kind: input, shape index: {}]   ;;  %s2596_s6 = inlined_call_operand.vmem [shape: f32[24,512], index: 6, kind: output, shape index: {0}]   ;;  %s2597_s4 = inlined_call_operand.vmem [shape: f32[8,216], index: 4, kind: input, shape index: {}]   ;;  %s2598_s5 = inlined_call_operand.vmem [shape: f32[8,1], index: 5, kind: input, shape index: {}]   ;;  %s2599_s7 = inlined_call_operand.vmem [shape: f32[8,512], index: 7, kind: output, shape index: {1}]  }
   0x1   :  { %v1443_v0 = vld [vmem:[%s2592_s0 + $0x10] sm:$0xff]  ;;  %v1448_v1 = vld [vmem:[%s2592_s0] sm:$0xff]  ;;  %v1457_v2 = vld [vmem:[%s2592_s0 + $0x18] sm:$0xff]  ;;  %s1393_s11 = smov 127   ;;  %s1394_s12 = smov 1   ;;  %470 = vmatprep.mubr.f32.mxu0 %v1397_v4  ;;  %553 = vmatprep.mubr.f32.mxu1 %v1397_v4  ;;  %vm1204_vm9 = vcmask 719872  }
   0x2   :  { %306 = vrot.lane.b32.xlu1 %v1443_v0, %s1390_s28  ;;  %302 = vrot.lane.b32.xlu0 %v1448_v1, %s1390_s28  ;;  %v1462_v3 = vld [vmem:[%s2592_s0 + $0x8] sm:$0xff]  ;;  %s1392_s0 = smov 113   ;;  %s1395_s13 = smov 15   ;;  %v378_v6 = vld [vmem:[%s2593_s3] sm:$0xff]  ;;  %v1535_v10 = vand.u32 127, %v45_v9  ;;  %v1550_v17 = vshrl.u32 %v45_v9, 7 }
   0x3   :  { %s1396_s14 = smov 16   ;;  %s1398_s15 = smov 17   ;;  %1384 = vset.pattern.permute.xlu0 %v1399_v5  ;;  %1385 = vset.pattern.permute.xlu1 %v1399_v5  ;;  %v380_v7 = vld [vmem:[%s2593_s3 + $0x10] sm:$0xff]  ;;  %v379_v8 = vld [vmem:[%s2593_s3 + $0x8] sm:$0xff]  ;;  %v1365_v14 = vld [vmem:[%s2594_s1 + $0x38] ss:$0 sm:$0xff] }
   0x4   :  { %v1363_v13 = vld [vmem:[%s2594_s1 + $0x28] ss:$0 sm:$0xff]  ;;  %vm310_vm0 = vcmp.lt.s32.totalorder %v1535_v10, 111  ;;  %v1362_v15 = vld [vmem:[%s2594_s1 + $0x20] ss:$0 sm:$0xff]  ;;  %v280_v29 = vsub.s32 7, %v1550_v17 }
   0x5   :  { %v1364_v16 = vld [vmem:[%s2594_s1 + $0x30] ss:$0 sm:$0xff]  ;;  %v1563_v28 = vld [vmem:[%s2594_s1 + $0x8] sm:$0xff]  ;;  %v1569_v30 = vld [vmem:[%s2594_s1 + $0x18] sm:$0xff]  ;;  %vm273_vm1 = vcmp.lt.s32.totalorder %v1535_v10, 112  ;;  %v243_v49 = vsub.s32 6, %v1550_v17 }
   0x6   :  { %308 = vrot.lane.b32.xlu1 %v1457_v2, %s1390_s28  ;;  %304 = vrot.lane.b32.xlu0 %v1462_v3, %s1390_s28  ;;  %v1574_v31 = vld [vmem:[%s2594_s1 + $0x10] sm:$0xff]  ;;  %v1579_v34 = vld [vmem:[%s2594_s1] sm:$0xff]  ;;  %v1583_v35 = vrot.slane %v1563_v28, %v280_v29  ;;  %v1586_v36 = vrot.slane %v1569_v30, %v280_v29  ;;  %vm236_vm2 = vcmp.lt.s32.totalorder %v1535_v10, 113  ;;  %vm199_vm3 = vcmp.lt.s32.totalorder %v1535_v10, 127 }
   0x7   :  { %v1589_v37 = vrot.slane %v1574_v31, %v280_v29  ;;  %v1592_v38 = vrot.slane %v1579_v34, %v280_v29  ;;  %v1609_v52 = vrot.slane %v1563_v28, %v243_v49  ;;  %v1612_v53 = vrot.slane %v1569_v30, %v243_v49 }
   0x8   :  { %2638 = vst [vmem:[#allocation4_spill] sm:$0xff] %v1583_v35  ;;  %2639 = vst [vmem:[#allocation5_spill] sm:$0xff] %v1586_v36  ;;  %v1615_v54 = vrot.slane %v1574_v31, %v243_v49  ;;  %v1618_v55 = vrot.slane %v1579_v34, %v243_v49  ;;  %vm158_vm4 = vcmp.lt.s32.totalorder %v1535_v10, 1  ;;  %vm121_vm5 = vcmp.lt.s32.totalorder %v1535_v10, 15 }
   0x9   :  { %2640 = vst [vmem:[#allocation6_spill] sm:$0xff] %v1589_v37  ;;  %2641 = vst [vmem:[#allocation7_spill] sm:$0xff] %v1592_v38  ;;  %vm84_vm6 = vcmp.lt.s32.totalorder %v1535_v10, 16  ;;  %vm47_vm7 = vcmp.lt.s32.totalorder %v1535_v10, 17 }
   0xa   :  { %267 = vrot.lane.b32.xlu1 %v1462_v3, %s1391_s10  ;;  %265 = vrot.lane.b32.xlu0 %v1448_v1, %s1391_s10  ;;  %2642 = vst [vmem:[#allocation8_spill] sm:$0xff] %v1609_v52  ;;  %2643 = vst [vmem:[#allocation9_spill] sm:$0xff] %v1612_v53 }
   0xb   :  { %2644 = vst [vmem:[#allocation10_spill] sm:$0xff] %v1615_v54  ;;  %2645 = vst [vmem:[#allocation11_spill] sm:$0xff] %v1618_v55 }
   0xe   :  { %271 = vrot.lane.b32.xlu1 %v1457_v2, %s1391_s10  ;;  %269 = vrot.lane.b32.xlu0 %v1443_v0, %s1391_s10 }
  0x12   :  { %230 = vrot.lane.b32.xlu1 %v1462_v3, %s1392_s0  ;;  %228 = vrot.lane.b32.xlu0 %v1448_v1, %s1392_s0 }
  0x16   :  { %234 = vrot.lane.b32.xlu1 %v1457_v2, %s1392_s0  ;;  %232 = vrot.lane.b32.xlu0 %v1443_v0, %s1392_s0 }
  0x1a   :  { %193 = vrot.lane.b32.xlu1 %v1462_v3, %s1393_s11  ;;  %191 = vrot.lane.b32.xlu0 %v1448_v1, %s1393_s11 }
  0x1e   :  { %197 = vrot.lane.b32.xlu1 %v1457_v2, %s1393_s11  ;;  %195 = vrot.lane.b32.xlu0 %v1443_v0, %s1393_s11 }
  0x22   :  { %152 = vrot.lane.b32.xlu1 %v1462_v3, %s1394_s12  ;;  %150 = vrot.lane.b32.xlu0 %v1448_v1, %s1394_s12 }
  0x26   :  { %156 = vrot.lane.b32.xlu1 %v1457_v2, %s1394_s12  ;;  %154 = vrot.lane.b32.xlu0 %v1443_v0, %s1394_s12 }
  0x2a   :  { %115 = vrot.lane.b32.xlu1 %v1462_v3, %s1395_s13  ;;  %113 = vrot.lane.b32.xlu0 %v1448_v1, %s1395_s13 }
  0x2e   :  { %119 = vrot.lane.b32.xlu1 %v1457_v2, %s1395_s13  ;;  %117 = vrot.lane.b32.xlu0 %v1443_v0, %s1395_s13 }
  0x32   :  { %78 = vrot.lane.b32.xlu1 %v1462_v3, %s1396_s14  ;;  %76 = vrot.lane.b32.xlu0 %v1448_v1, %s1396_s14 }
  0x36   :  { %82 = vrot.lane.b32.xlu1 %v1457_v2, %s1396_s14  ;;  %80 = vrot.lane.b32.xlu0 %v1443_v0, %s1396_s14 }
  0x3a   :  { %39 = vrot.lane.b32.xlu1 %v1462_v3, %s1398_s15  ;;  %37 = vrot.lane.b32.xlu0 %v1448_v1, %s1398_s15 }
  0x3e   :  { %43 = vrot.lane.b32.xlu1 %v1457_v2, %s1398_s15  ;;  %41 = vrot.lane.b32.xlu0 %v1443_v0, %s1398_s15 }
  0x42   :  { %383 = vperm.xlu0 %1384, %v378_v6   ;;  %393 = vperm.xlu1 %1385, %v380_v7   ;;  %v206_v7 = vsub.s32 5, %v1550_v17 }
  0x46   :  { %388 = vperm.xlu1 %1385, %v379_v8  }
  0x74   :  { %v307_v11 = vpop.permute.xlu1 %306  ;;  %v303_v12 = vpop.permute.xlu0 %302 }
  0x78   :  { %v309_v18 = vpop.permute.xlu1 %308  ;;  %v305_v19 = vpop.permute.xlu0 %304 }
  0x79   :  { %v312_v20 = vsel %vm310_vm0, %v305_v19, %v307_v11  ;;  %v314_v21 = vsel %vm310_vm0, %v309_v18, %v303_v12  ;;  %v313_v22 = vsel %vm310_vm0, %v303_v12, %v305_v19  ;;  %v311_v23 = vsel %vm310_vm0, %v307_v11, %v309_v18 }
  0x7a   :  { %v332_v24 = vmul.f32 %v1363_v13, %v312_v20  ;;  %v334_v25 = vmul.f32 %v1365_v14, %v314_v21  ;;  %v331_v26 = vmul.f32 %v1362_v15, %v313_v22  ;;  %v333_v27 = vmul.f32 %v1364_v16, %v311_v23 }
  0x7b   :  { %v1635_v11 = vrot.slane %v1563_v28, %v206_v7  ;;  %v1638_v12 = vrot.slane %v1569_v30, %v206_v7  ;;  %v1641_v13 = vrot.slane %v1574_v31, %v206_v7  ;;  %v165_v14 = vsub.s32 3, %v1550_v17 }
  0x7c   :  { %v268_v32 = vpop.permute.xlu1 %267  ;;  %420 = vmatprep.subr.mxu0 %v332_v24  ;;  %503 = vmatprep.subr.mxu1 %v334_v25  ;;  %v266_v33 = vpop.permute.xlu0 %265  ;;  %v1645_v15 = vrot.slane %v1579_v34, %v206_v7 }
  0x7d   :  { %421 = vmatpush1.msra.mxu0 %v331_v26  ;;  %504 = vmatpush1.msra.mxu1 %v333_v27  ;;  %v276_v39 = vsel %vm273_vm1, %v266_v33, %v268_v32  ;;  %2646 = vst [vmem:[#allocation12_spill] sm:$0xff] %v1635_v11  ;;  %2647 = vst [vmem:[#allocation13_spill] sm:$0xff] %v1638_v12  ;;  %v1660_v26 = vrot.slane %v1563_v28, %v165_v14 }
  0x7e   :  { %v294_v48 = vmul.f32 %v1592_v38, %v276_v39  ;;  %2648 = vst [vmem:[#allocation14_spill] sm:$0xff] %v1641_v13  ;;  %2649 = vst [vmem:[#allocation15_spill] sm:$0xff] %v1645_v15  ;;  %v1666_v39 = vrot.slane %v1579_v34, %v165_v14 }
  0x80   :  { %v272_v40 = vpop.permute.xlu1 %271  ;;  %v270_v41 = vpop.permute.xlu0 %269 }
  0x81   :  { %v277_v42 = vsel %vm273_vm1, %v272_v40, %v266_v33  ;;  %v274_v43 = vsel %vm273_vm1, %v270_v41, %v272_v40  ;;  %v275_v44 = vsel %vm273_vm1, %v268_v32, %v270_v41  ;;  %v1672_v41 = vrot.slane %v1569_v30, %v165_v14 }
  0x82   :  { %v295_v45 = vmul.f32 %v1583_v35, %v275_v44  ;;  %v297_v46 = vmul.f32 %v1586_v36, %v277_v42  ;;  %v296_v47 = vmul.f32 %v1589_v37, %v274_v43  ;;  %v1675_v42 = vrot.slane %v1574_v31, %v165_v14 }
  0x83   :  { %v128_v43 = vsub.s32 2, %v1550_v17 }
  0x84   :  { %v231_v50 = vpop.permute.xlu1 %230  ;;  %422 = vmatprep.subr.mxu0 %v295_v45  ;;  %505 = vmatprep.subr.mxu1 %v297_v46  ;;  %v229_v51 = vpop.permute.xlu0 %228 }
  0x85   :  { %423 = vmatpush1.msra.mxu0 %v294_v48  ;;  %506 = vmatpush1.msra.mxu1 %v296_v47  ;;  %v239_v56 = vsel %vm236_vm2, %v229_v51, %v231_v50  ;;  %v1691_v48 = vrot.slane %v1563_v28, %v128_v43 }
  0x86   :  { %v257_v6 = vmul.f32 %v1618_v55, %v239_v56  ;;  %v1696_v56 = vrot.slane %v1579_v34, %v128_v43 }
  0x88   :  { %v235_v57 = vpop.permute.xlu1 %234  ;;  %v233_v58 = vpop.permute.xlu0 %232 }
  0x89   :  { %v240_v59 = vsel %vm236_vm2, %v235_v57, %v229_v51  ;;  %v237_v60 = vsel %vm236_vm2, %v233_v58, %v235_v57  ;;  %v238_v61 = vsel %vm236_vm2, %v231_v50, %v233_v58  ;;  %v1700_v58 = vrot.slane %v1569_v30, %v128_v43 }
  0x8a   :  { %v258_v62 = vmul.f32 %v1609_v52, %v238_v61  ;;  %v260_v63 = vmul.f32 %v1612_v53, %v240_v59  ;;  %v259_v5 = vmul.f32 %v1615_v54, %v237_v60  ;;  %v1703_v59 = vrot.slane %v1574_v31, %v128_v43 }
  0x8b   :  { %v91_v60 = vsub.s32 1, %v1550_v17 }
  0x8c   :  { %v194_v8 = vpop.permute.xlu1 %193  ;;  %424 = vmatprep.subr.mxu0 %v258_v62  ;;  %507 = vmatprep.subr.mxu1 %v260_v63  ;;  %v192_v9 = vpop.permute.xlu0 %191 }
  0x8d   :  { %425 = vmatpush1.msra.mxu0 %v257_v6  ;;  %508 = vmatpush1.msra.mxu1 %v259_v5  ;;  %v202_v16 = vsel %vm199_vm3, %v192_v9, %v194_v8  ;;  %v1717_v14 = vrot.slane %v1563_v28, %v91_v60 }
  0x8e   :  { %v220_v27 = vmul.f32 %v1645_v15, %v202_v16 }
  0x90   :  { %v198_v18 = vpop.permute.xlu1 %197  ;;  %v196_v19 = vpop.permute.xlu0 %195 }
  0x91   :  { %v203_v20 = vsel %vm199_vm3, %v198_v18, %v192_v9  ;;  %v200_v21 = vsel %vm199_vm3, %v196_v19, %v198_v18  ;;  %v201_v22 = vsel %vm199_vm3, %v194_v8, %v196_v19 }
  0x92   :  { %v221_v23 = vmul.f32 %v1635_v11, %v201_v22  ;;  %v223_v24 = vmul.f32 %v1638_v12, %v203_v20  ;;  %v222_v25 = vmul.f32 %v1641_v13, %v200_v21  ;;  %v1722_v20 = vrot.slane %v1579_v34, %v91_v60 }
  0x93   :  { %v1726_v22 = vrot.slane %v1569_v30, %v91_v60 }
  0x94   :  { %v153_v29 = vpop.permute.xlu1 %152  ;;  %426 = vmatprep.subr.mxu0 %v221_v23  ;;  %509 = vmatprep.subr.mxu1 %v223_v24  ;;  %v151_v32 = vpop.permute.xlu0 %150  ;;  %v1729_v23 = vrot.slane %v1574_v31, %v91_v60  ;;  %v54_v24 = vsub.s32 0, %v1550_v17 }
  0x95   :  { %v161_v33 = vsel %vm158_vm4, %v151_v32, %v153_v29  ;;  %427 = vmatpush1.msra.mxu0 %v220_v27  ;;  %510 = vmatpush1.msra.mxu1 %v222_v25 }
  0x96   :  { %428 = vmatprep.subr.mxu0 %v1462_v3  ;;  %v180_v40 = vmul.f32 %v1660_v26, %v161_v33  ;;  %511 = vmatprep.subr.mxu1 %v1457_v2 }
  0x97   :  { %429 = vmatpush1.msra.mxu0 %v1448_v1  ;;  %512 = vmatpush1.msra.mxu1 %v1443_v0 }
  0x98   :  { %v157_v44 = vpop.permute.xlu1 %156  ;;  %430 = vmatprep.subr.mxu0 %v180_v40  ;;  %v155_v45 = vpop.permute.xlu0 %154 }
  0x99   :  { %v162_v3 = vsel %vm158_vm4, %v157_v44, %v151_v32  ;;  %v159_v2 = vsel %vm158_vm4, %v155_v45, %v157_v44  ;;  %v160_v46 = vsel %vm158_vm4, %v153_v29, %v155_v45  ;;  %v1743_v44 = vrot.slane %v1563_v28, %v54_v24 }
  0x9a   :  { %v179_v47 = vmul.f32 %v1666_v39, %v162_v3  ;;  %v182_v1 = vmul.f32 %v1672_v41, %v159_v2  ;;  %v181_v0 = vmul.f32 %v1675_v42, %v160_v46 }
  0x9c   :  { %v116_v49 = vpop.permute.xlu1 %115  ;;  %431 = vmatpush1.msra.mxu0 %v179_v47  ;;  %513 = vmatprep.subr.mxu1 %v182_v1  ;;  %v114_v50 = vpop.permute.xlu0 %113  ;;  %v1749_v47 = vrot.slane %v1579_v34, %v54_v24  ;;  %v1752_v1 = vrot.slane %v1569_v30, %v54_v24 }
  0x9d   :  { %v124_v51 = vsel %vm121_vm5, %v114_v50, %v116_v49  ;;  %514 = vmatpush1.msra.mxu1 %v181_v0  ;;  %v1755_v0 = vrot.slane %v1574_v31, %v54_v24  ;;  %v375_v31 = vld [vmem:[%s2595_s2] sm:$0xff] }
  0x9e   :  { %v143_v57 = vmul.f32 %v1691_v48, %v124_v51 }
  0xa0   :  { %v120_v61 = vpop.permute.xlu1 %119  ;;  %432 = vmatprep.subr.mxu0 %v143_v57  ;;  %v118_v62 = vpop.permute.xlu0 %117 }
  0xa1   :  { %v125_v63 = vsel %vm121_vm5, %v120_v61, %v114_v50  ;;  %v122_v5 = vsel %vm121_vm5, %v118_v62, %v120_v61  ;;  %v123_v6 = vsel %vm121_vm5, %v116_v49, %v118_v62  ;;  %v376_v61 = vld [vmem:[%s2595_s2 + $0x8] sm:$0xff]  ;;  %v377_v62 = vld [vmem:[%s2595_s2 + $0x10] sm:$0xff] }
  0xa2   :  { %v142_v7 = vmul.f32 %v1696_v56, %v125_v63  ;;  %v145_v8 = vmul.f32 %v1700_v58, %v122_v5  ;;  %v144_v9 = vmul.f32 %v1703_v59, %v123_v6 }
  0xa4   :  { %v79_v16 = vpop.permute.xlu1 %78  ;;  %433 = vmatpush1.msra.mxu0 %v142_v7  ;;  %515 = vmatprep.subr.mxu1 %v145_v8  ;;  %v77_v18 = vpop.permute.xlu0 %76 }
  0xa5   :  { %v87_v19 = vsel %vm84_vm6, %v77_v18, %v79_v16  ;;  %516 = vmatpush1.msra.mxu1 %v144_v9 }
  0xa6   :  { %v106_v21 = vmul.f32 %v1717_v14, %v87_v19 }
  0xa8   :  { %v83_v25 = vpop.permute.xlu1 %82  ;;  %434 = vmatprep.subr.mxu0 %v106_v21  ;;  %v81_v27 = vpop.permute.xlu0 %80 }
  0xa9   :  { %v88_v29 = vsel %vm84_vm6, %v83_v25, %v77_v18  ;;  %v85_v32 = vsel %vm84_vm6, %v81_v27, %v83_v25  ;;  %v86_v33 = vsel %vm84_vm6, %v79_v16, %v81_v27 }
  0xaa   :  { %v105_v40 = vmul.f32 %v1722_v20, %v88_v29  ;;  %v108_v43 = vmul.f32 %v1726_v22, %v85_v32  ;;  %v107_v17 = vmul.f32 %v1729_v23, %v86_v33 }
  0xac   :  { %v40_v45 = vpop.permute.xlu1 %39  ;;  %435 = vmatpush1.msra.mxu0 %v105_v40  ;;  %517 = vmatprep.subr.mxu1 %v108_v43  ;;  %v38_v3 = vpop.permute.xlu0 %37 }
  0xad   :  { %v50_v2 = vsel %vm47_vm7, %v38_v3, %v40_v45  ;;  %518 = vmatpush1.msra.mxu1 %v107_v17 }
  0xae   :  { %v69_v46 = vmul.f32 %v1743_v44, %v50_v2 }
  0xb0   :  { %v44_v28 = vpop.permute.xlu1 %43  ;;  %436 = vmatprep.subr.mxu0 %v69_v46  ;;  %v42_v49 = vpop.permute.xlu0 %41 }
  0xb1   :  { %v51_v50 = vsel %vm47_vm7, %v44_v28, %v38_v3  ;;  %v48_v51 = vsel %vm47_vm7, %v42_v49, %v44_v28  ;;  %v49_v57 = vsel %vm47_vm7, %v40_v45, %v42_v49 }
  0xb2   :  { %v68_v34 = vmul.f32 %v1749_v47, %v51_v50  ;;  %v71_v30 = vmul.f32 %v1752_v1, %v48_v51  ;;  %v70_v60 = vmul.f32 %v1755_v0, %v49_v57 }
  0xb4   :  { %437 = vmatpush1.msra.mxu0 %v68_v34  ;;  %519 = vmatprep.subr.mxu1 %v71_v30 }
  0xb5   :  { %1366 = vmatmul.mubr.msk.f32.vlgmr.msra.gmra.mxu0 %vm396_vm8, %v375_v31  ;;  %520 = vmatpush1.msra.mxu1 %v70_v60 }
  0xb6   :  { %1369 = vmatmul.mubr.msk.f32.vlgmr.msra.gmra.mxu1 %vm396_vm8, %v375_v31  ;;  %476 = vmatprep.mubr.f32.mxu0 %v1397_v4 }
  0xb7   :  { %559 = vmatprep.mubr.f32.mxu1 %v1397_v4 }
  0xb9   :  { %1367 = vmatmul.mubr.msk.f32.gmra.mxu0 %vm396_vm8, %v376_v61 }
  0xba   :  { %1370 = vmatmul.mubr.msk.f32.gmra.mxu1 %vm396_vm8, %v376_v61  ;;  %482 = vmatprep.mubr.f32.mxu0 %v1397_v4 }
  0xbb   :  { %565 = vmatprep.mubr.f32.mxu1 %v1397_v4 }
  0xbd   :  { %1368 = vmatmul.mubr.msk.f32.gmra.mxu0 %vm396_vm8, %v377_v62  ;;  %v394_v63 = vpop.permute.xlu1 %393  ;;  %v384_v5 = vpop.permute.xlu0 %383 }
  0xbe   :  { %1371 = vmatmul.mubr.msk.f32.gmra.mxu1 %vm396_vm8, %v377_v62 }
  0xc1   :  { %v389_v18 = vpop.permute.xlu1 %388 }
 0x175   :  { %v472_v6 = vpop.f32.mrf.mxu0 }
 0x176   :  { %v473_v7 = vadd.f32 %v472_v6, %v384_v5  ;;  %v555_v8 = vpop.f32.mrf.mxu1 }
 0x177   :  { %v556_v9 = vadd.f32 %v555_v8, %v384_v5  ;;  %v474_v16 = vpop.f32.mrf.mxu0 }
 0x178   :  { %v1785_v19 = vmax.f32 %v473_v7, 0.0  ;;  %v475_v21 = vadd.f32 %v474_v16, %v384_v5  ;;  %v557_v24 = vpop.f32.mrf.mxu1 }
 0x179   :  { %v1787_v25 = vmax.f32 %v556_v9, 0.0  ;;  %v558_v27 = vadd.f32 %v557_v24, %v384_v5  ;;  %v478_v4 = vpop.f32.mrf.mxu0 }
 0x17a   :  { %584 = vst [vmem:[%s2596_s6] sm:$0xff] %v1785_v19  ;;  %v1793_v29 = vmax.f32 %v475_v21, 0.0  ;;  %848 = vrot.lane.b32.xlu0 %v1785_v19, %s1393_s11  ;;  %v561_v32 = vpop.f32.mrf.mxu1  ;;  %v479_v33 = vadd.f32 %v478_v4, %v389_v18 }
 0x17b   :  { %586 = vst [vmem:[%s2596_s6 + $0x10] sm:$0xff] %v1787_v25  ;;  %v1801_v40 = vmax.f32 %v558_v27, 0.0  ;;  %v480_v43 = vpop.f32.mrf.mxu0  ;;  %v562_v17 = vadd.f32 %v561_v32, %v389_v18 }
 0x17c   :  { %585 = vst [vmem:[%s2596_s6 + $0x8] sm:$0xff] %v1793_v29  ;;  %854 = vrot.lane.b32.xlu1 %v1793_v29, %s1393_s11  ;;  %v563_v45 = vpop.f32.mrf.mxu1  ;;  %v481_v3 = vadd.f32 %v480_v43, %v389_v18  ;;  %v1809_v2 = vmax.f32 %v479_v33, 0.0 }
 0x17d   :  { %587 = vst [vmem:[%s2596_s6 + $0x18] sm:$0xff] %v1801_v40  ;;  %v484_v46 = vpop.f32.mrf.mxu0  ;;  %v564_v28 = vadd.f32 %v563_v45, %v389_v18  ;;  %v1815_v49 = vmax.f32 %v562_v17, 0.0 }
 0x17e   :  { %860 = vrot.lane.b32.xlu0 %v1787_v25, %s1393_s11  ;;  %v485_v50 = vadd.f32 %v484_v46, %v394_v63  ;;  %v567_v51 = vpop.f32.mrf.mxu1  ;;  %v1819_v57 = vmax.f32 %v481_v3, 0.0  ;;  %588 = vst [vmem:[%s2596_s6 + $0x20] sm:$0xff] %v1809_v2 }
 0x17f   :  { %v568_v34 = vadd.f32 %v567_v51, %v394_v63  ;;  %v1825_v30 = vmax.f32 %v564_v28, 0.0  ;;  %590 = vst [vmem:[%s2596_s6 + $0x30] sm:$0xff] %v1815_v49  ;;  %v486_v31 = vpop.f32.mrf.mxu0 }
 0x180   :  { %866 = vrot.lane.b32.xlu1 %v1801_v40, %s1393_s11  ;;  %v1833_v60 = vmax.f32 %v485_v50, 0.0  ;;  %589 = vst [vmem:[%s2596_s6 + $0x28] sm:$0xff] %v1819_v57  ;;  %v487_v61 = vadd.f32 %v486_v31, %v394_v63  ;;  %v569_v62 = vpop.f32.mrf.mxu1 }
 0x181   :  { %v1839_v5 = vmax.f32 %v568_v34, 0.0  ;;  %591 = vst [vmem:[%s2596_s6 + $0x38] sm:$0xff] %v1825_v30  ;;  %v570_v6 = vadd.f32 %v569_v62, %v394_v63 }
 0x182   :  { %776 = vrot.lane.b32.xlu0 %v1785_v19, %s1394_s12  ;;  %592 = vst [vmem:[%s2596_s6 + $0x40] sm:$0xff] %v1833_v60  ;;  %v1851_v7 = vmax.f32 %v487_v61, 0.0 }
 0x183   :  { %594 = vst [vmem:[%s2596_s6 + $0x50] sm:$0xff] %v1839_v5  ;;  %v1857_v8 = vmax.f32 %v570_v6, 0.0 }
 0x184   :  { %782 = vrot.lane.b32.xlu1 %v1793_v29, %s1394_s12  ;;  %593 = vst [vmem:[%s2596_s6 + $0x48] sm:$0xff] %v1851_v7 }
 0x185   :  { %595 = vst [vmem:[%s2596_s6 + $0x58] sm:$0xff] %v1857_v8 }
 0x186   :  { %788 = vrot.lane.b32.xlu0 %v1787_v25, %s1394_s12 }
 0x188   :  { %794 = vrot.lane.b32.xlu1 %v1801_v40, %s1394_s12 }
 0x18a   :  { %716 = vrot.lane.b32.xlu0 %v1785_v19, %s1395_s13 }
 0x18c   :  { %722 = vrot.lane.b32.xlu1 %v1793_v29, %s1395_s13 }
 0x18e   :  { %728 = vrot.lane.b32.xlu0 %v1787_v25, %s1395_s13 }
 0x190   :  { %734 = vrot.lane.b32.xlu1 %v1801_v40, %s1395_s13 }
 0x192   :  { %656 = vrot.lane.b32.xlu0 %v1785_v19, %s1396_s14 }
 0x194   :  { %662 = vrot.lane.b32.xlu1 %v1793_v29, %s1396_s14 }
 0x196   :  { %668 = vrot.lane.b32.xlu0 %v1787_v25, %s1396_s14 }
 0x198   :  { %674 = vrot.lane.b32.xlu1 %v1801_v40, %s1396_s14 }
 0x19a   :  { %596 = vrot.lane.b32.xlu0 %v1785_v19, %s1398_s15 }
 0x19c   :  { %602 = vrot.lane.b32.xlu1 %v1793_v29, %s1398_s15 }
 0x19e   :  { %608 = vrot.lane.b32.xlu0 %v1787_v25, %s1398_s15 }
 0x1a0   :  { %614 = vrot.lane.b32.xlu1 %v1801_v40, %s1398_s15 }
 0x1a2   :  { %1028 = vrot.lane.b32.xlu0 %v1785_v19, %s1390_s28 }
 0x1a4   :  { %1034 = vrot.lane.b32.xlu1 %v1793_v29, %s1390_s28 }
 0x1a6   :  { %1040 = vrot.lane.b32.xlu0 %v1787_v25, %s1390_s28 }
 0x1a8   :  { %1046 = vrot.lane.b32.xlu1 %v1801_v40, %s1390_s28 }
 0x1aa   :  { %968 = vrot.lane.b32.xlu0 %v1785_v19, %s1391_s10 }
 0x1ac   :  { %974 = vrot.lane.b32.xlu1 %v1793_v29, %s1391_s10 }
 0x1ae   :  { %980 = vrot.lane.b32.xlu0 %v1787_v25, %s1391_s10 }
 0x1b0   :  { %986 = vrot.lane.b32.xlu1 %v1801_v40, %s1391_s10 }
 0x1b2   :  { %908 = vrot.lane.b32.xlu0 %v1785_v19, %s1392_s0 }
 0x1b4   :  { %914 = vrot.lane.b32.xlu1 %v1793_v29, %s1392_s0 }
 0x1b6   :  { %920 = vrot.lane.b32.xlu0 %v1787_v25, %s1392_s0 }
 0x1b8   :  { %926 = vrot.lane.b32.xlu1 %v1801_v40, %s1392_s0 }
 0x1ba   :  { %778 = vrot.lane.b32.xlu0 %v1809_v2, %s1394_s12 }
 0x1bc   :  { %784 = vrot.lane.b32.xlu1 %v1819_v57, %s1394_s12 }
 0x1be   :  { %790 = vrot.lane.b32.xlu0 %v1815_v49, %s1394_s12 }
 0x1c0   :  { %796 = vrot.lane.b32.xlu1 %v1825_v30, %s1394_s12 }
 0x1c2   :  { %718 = vrot.lane.b32.xlu0 %v1809_v2, %s1395_s13 }
 0x1c4   :  { %724 = vrot.lane.b32.xlu1 %v1819_v57, %s1395_s13 }
 0x1c6   :  { %730 = vrot.lane.b32.xlu0 %v1815_v49, %s1395_s13 }
 0x1c8   :  { %736 = vrot.lane.b32.xlu1 %v1825_v30, %s1395_s13 }
 0x1ca   :  { %658 = vrot.lane.b32.xlu0 %v1809_v2, %s1396_s14 }
 0x1cc   :  { %664 = vrot.lane.b32.xlu1 %v1819_v57, %s1396_s14 }
 0x1ce   :  { %670 = vrot.lane.b32.xlu0 %v1815_v49, %s1396_s14 }
 0x1d0   :  { %676 = vrot.lane.b32.xlu1 %v1825_v30, %s1396_s14 }
 0x1d2   :  { %598 = vrot.lane.b32.xlu0 %v1809_v2, %s1398_s15 }
 0x1d4   :  { %604 = vrot.lane.b32.xlu1 %v1819_v57, %s1398_s15 }
 0x1d6   :  { %610 = vrot.lane.b32.xlu0 %v1815_v49, %s1398_s15 }
 0x1d8   :  { %616 = vrot.lane.b32.xlu1 %v1825_v30, %s1398_s15 }
 0x1da   :  { %1030 = vrot.lane.b32.xlu0 %v1809_v2, %s1390_s28 }
 0x1dc   :  { %1036 = vrot.lane.b32.xlu1 %v1819_v57, %s1390_s28 }
 0x1de   :  { %1042 = vrot.lane.b32.xlu0 %v1815_v49, %s1390_s28 }
 0x1e0   :  { %1048 = vrot.lane.b32.xlu1 %v1825_v30, %s1390_s28 }
 0x1e2   :  { %970 = vrot.lane.b32.xlu0 %v1809_v2, %s1391_s10 }
 0x1e4   :  { %976 = vrot.lane.b32.xlu1 %v1819_v57, %s1391_s10 }
 0x1e6   :  { %982 = vrot.lane.b32.xlu0 %v1815_v49, %s1391_s10 }
 0x1e8   :  { %988 = vrot.lane.b32.xlu1 %v1825_v30, %s1391_s10 }
 0x1ea   :  { %910 = vrot.lane.b32.xlu0 %v1809_v2, %s1392_s0 }
 0x1ec   :  { %916 = vrot.lane.b32.xlu1 %v1819_v57, %s1392_s0  ;;  %v849_v63 = vpop.permute.xlu0 %848 }
 0x1ee   :  { %v855_v9 = vpop.permute.xlu1 %854  ;;  %922 = vrot.lane.b32.xlu0 %v1815_v49, %s1392_s0 }
 0x1ef   :  { %v878_v16 = vsel %vm199_vm3, %v849_v63, %v855_v9 }
 0x1f0   :  { %928 = vrot.lane.b32.xlu1 %v1825_v30, %s1392_s0  ;;  %v861_v18 = vpop.permute.xlu0 %860  ;;  %v884_v4 = vmul.f32 %v878_v16, %v1645_v15 }
 0x1f1   :  { %v875_v21 = vsel %vm199_vm3, %v855_v9, %v861_v18 }
 0x1f2   :  { %v885_v24 = vmul.f32 %v875_v21, %v1635_v11  ;;  %v867_v27 = vpop.permute.xlu1 %866  ;;  %850 = vrot.lane.b32.xlu0 %v1809_v2, %s1393_s11 }
 0x1f3   :  { %v872_v32 = vsel %vm199_vm3, %v861_v18, %v867_v27  ;;  %v881_v33 = vsel %vm199_vm3, %v867_v27, %v849_v63 }
 0x1f4   :  { %v886_v43 = vmul.f32 %v872_v32, %v1641_v13  ;;  %v887_v17 = vmul.f32 %v881_v33, %v1638_v12  ;;  %856 = vrot.lane.b32.xlu1 %v1819_v57, %s1393_s11  ;;  %1208 = vmatprep.subr.mxu0 %v885_v24  ;;  %v777_v45 = vpop.permute.xlu0 %776 }
 0x1f5   :  { %1209 = vmatpush1.msra.mxu0 %v884_v4 }
 0x1f6   :  { %v783_v3 = vpop.permute.xlu1 %782  ;;  %780 = vrot.lane.b32.xlu0 %v1833_v60, %s1394_s12  ;;  %1210 = vmatprep.subr.mxu0 %v1851_v7 }
 0x1f7   :  { %v1998_v46 = vsel %vm158_vm4, %v777_v45, %v783_v3  ;;  %1279 = vmatprep.subr.mxu1 %v887_v17  ;;  %1211 = vmatpush1.msra.mxu0 %v1833_v60 }
 0x1f8   :  { %1280 = vmatpush1.msra.mxu1 %v886_v43  ;;  %786 = vrot.lane.b32.xlu1 %v1851_v7, %s1394_s12  ;;  %v789_v28 = vpop.permute.xlu0 %788 }
 0x1f9   :  { %1212 = vmatprep.subr.mxu0 %v1819_v57  ;;  %1281 = vmatprep.subr.mxu1 %v1857_v8  ;;  %v2007_v50 = vsel %vm158_vm4, %v783_v3, %v789_v28 }
 0x1fa   :  { %1213 = vmatpush1.msra.mxu0 %v1809_v2  ;;  %1282 = vmatpush1.msra.mxu1 %v1839_v5  ;;  %v795_v51 = vpop.permute.xlu1 %794 }
 0x1fb   :  { %v2013_v34 = vsel %vm158_vm4, %v789_v28, %v795_v51  ;;  %v2017_v31 = vsel %vm158_vm4, %v795_v51, %v777_v45  ;;  %792 = vrot.lane.b32.xlu0 %v1839_v5, %s1394_s12  ;;  %1214 = vmatprep.subr.mxu0 %v1793_v29 }
 0x1fc   :  { %1283 = vmatprep.subr.mxu1 %v1825_v30  ;;  %1215 = vmatpush1.msra.mxu0 %v1785_v19  ;;  %v717_v2 = vpop.permute.xlu0 %716 }
 0x1fd   :  { %1284 = vmatpush1.msra.mxu1 %v1815_v49  ;;  %798 = vrot.lane.b32.xlu1 %v1857_v8, %s1394_s12 }
 0x1fe   :  { %1285 = vmatprep.subr.mxu1 %v1801_v40  ;;  %v723_v57 = vpop.permute.xlu1 %722 }
 0x1ff   :  { %1286 = vmatpush1.msra.mxu1 %v1787_v25  ;;  %v2031_v61 = vsel %vm121_vm5, %v717_v2, %v723_v57  ;;  %720 = vrot.lane.b32.xlu0 %v1833_v60, %s1395_s13 }
 0x200   :  { %v729_v29 = vpop.permute.xlu0 %728 }
 0x201   :  { %726 = vrot.lane.b32.xlu1 %v1851_v7, %s1395_s13  ;;  %v2039_v19 = vsel %vm121_vm5, %v723_v57, %v729_v29 }
 0x202   :  { %v735_v62 = vpop.permute.xlu1 %734 }
 0x203   :  { %v2043_v40 = vsel %vm121_vm5, %v729_v29, %v735_v62  ;;  %v2047_v25 = vsel %vm121_vm5, %v735_v62, %v717_v2  ;;  %732 = vrot.lane.b32.xlu0 %v1839_v5, %s1395_s13 }
 0x204   :  { %v657_v6 = vpop.permute.xlu0 %656 }
 0x205   :  { %738 = vrot.lane.b32.xlu1 %v1857_v8, %s1395_s13 }
 0x206   :  { %v663_v63 = vpop.permute.xlu1 %662 }
 0x207   :  { %v2055_v9 = vsel %vm84_vm6, %v657_v6, %v663_v63  ;;  %660 = vrot.lane.b32.xlu0 %v1833_v60, %s1396_s14 }
 0x208   :  { %v669_v16 = vpop.permute.xlu0 %668 }
 0x209   :  { %666 = vrot.lane.b32.xlu1 %v1851_v7, %s1396_s14  ;;  %v2063_v18 = vsel %vm84_vm6, %v663_v63, %v669_v16 }
 0x20a   :  { %v675_v21 = vpop.permute.xlu1 %674 }
 0x20b   :  { %v2067_v24 = vsel %vm84_vm6, %v669_v16, %v675_v21  ;;  %v2071_v27 = vsel %vm84_vm6, %v675_v21, %v657_v6  ;;  %672 = vrot.lane.b32.xlu0 %v1839_v5, %s1396_s14 }
 0x20c   :  { %v597_v4 = vpop.permute.xlu0 %596 }
 0x20d   :  { %678 = vrot.lane.b32.xlu1 %v1857_v8, %s1396_s14 }
 0x20e   :  { %v603_v32 = vpop.permute.xlu1 %602 }
 0x20f   :  { %v2079_v33 = vsel %vm47_vm7, %v597_v4, %v603_v32  ;;  %600 = vrot.lane.b32.xlu0 %v1833_v60, %s1398_s15 }
 0x210   :  { %v609_v43 = vpop.permute.xlu0 %608 }
 0x211   :  { %606 = vrot.lane.b32.xlu1 %v1851_v7, %s1398_s15  ;;  %v2087_v17 = vsel %vm47_vm7, %v603_v32, %v609_v43 }
 0x212   :  { %2650 = vst [vmem:[#allocation16_spill] sm:$0xff] %v2087_v17  ;;  %v615_v45 = vpop.permute.xlu1 %614 }
 0x213   :  { %v2091_v3 = vsel %vm47_vm7, %v609_v43, %v615_v45  ;;  %v2095_v28 = vsel %vm47_vm7, %v615_v45, %v597_v4  ;;  %612 = vrot.lane.b32.xlu0 %v1839_v5, %s1398_s15 }
 0x214   :  { %2651 = vst [vmem:[#allocation17_spill] sm:$0xff] %v2091_v3  ;;  %v1029_v51 = vpop.permute.xlu0 %1028 }
 0x215   :  { %618 = vrot.lane.b32.xlu1 %v1857_v8, %s1398_s15 }
 0x216   :  { %v1035_v2 = vpop.permute.xlu1 %1034 }
 0x217   :  { %v2103_v57 = vsel %vm310_vm0, %v1029_v51, %v1035_v2  ;;  %1032 = vrot.lane.b32.xlu0 %v1833_v60, %s1390_s28 }
 0x218   :  { %2652 = vst [vmem:[#allocation18_spill] sm:$0xff] %v2103_v57  ;;  %v1041_v29 = vpop.permute.xlu0 %1040 }
 0x219   :  { %1038 = vrot.lane.b32.xlu1 %v1851_v7, %s1390_s28  ;;  %v2111_v62 = vsel %vm310_vm0, %v1035_v2, %v1041_v29 }
 0x21a   :  { %2653 = vst [vmem:[#allocation19_spill] sm:$0xff] %v2111_v62  ;;  %v1047_v6 = vpop.permute.xlu1 %1046 }
 0x21b   :  { %v2115_v63 = vsel %vm310_vm0, %v1041_v29, %v1047_v6  ;;  %v2119_v16 = vsel %vm310_vm0, %v1047_v6, %v1029_v51  ;;  %1044 = vrot.lane.b32.xlu0 %v1839_v5, %s1390_s28 }
 0x21c   :  { %2654 = vst [vmem:[#allocation20_spill] sm:$0xff] %v2115_v63  ;;  %2655 = vst [vmem:[#allocation21_spill] sm:$0xff] %v2119_v16  ;;  %v969_v21 = vpop.permute.xlu0 %968 }
 0x21d   :  { %1050 = vrot.lane.b32.xlu1 %v1857_v8, %s1390_s28 }
 0x21e   :  { %v975_v4 = vpop.permute.xlu1 %974 }
 0x21f   :  { %v2127_v32 = vsel %vm273_vm1, %v969_v21, %v975_v4  ;;  %972 = vrot.lane.b32.xlu0 %v1833_v60, %s1391_s10 }
 0x220   :  { %2656 = vst [vmem:[#allocation22_spill] sm:$0xff] %v2127_v32  ;;  %v981_v43 = vpop.permute.xlu0 %980 }
 0x221   :  { %978 = vrot.lane.b32.xlu1 %v1851_v7, %s1391_s10  ;;  %v2135_v45 = vsel %vm273_vm1, %v975_v4, %v981_v43 }
 0x222   :  { %2657 = vst [vmem:[#allocation23_spill] sm:$0xff] %v2135_v45  ;;  %v987_v51 = vpop.permute.xlu1 %986 }
 0x223   :  { %v2139_v2 = vsel %vm273_vm1, %v981_v43, %v987_v51  ;;  %v2143_v29 = vsel %vm273_vm1, %v987_v51, %v969_v21  ;;  %984 = vrot.lane.b32.xlu0 %v1839_v5, %s1391_s10 }
 0x224   :  { %2658 = vst [vmem:[#allocation24_spill] sm:$0xff] %v2139_v2  ;;  %2659 = vst [vmem:[#allocation25_spill] sm:$0xff] %v2143_v29  ;;  %v909_v6 = vpop.permute.xlu0 %908 }
 0x225   :  { %990 = vrot.lane.b32.xlu1 %v1857_v8, %s1391_s10 }
 0x226   :  { %v915_v12 = vpop.permute.xlu1 %914 }
 0x227   :  { %v2151_v4 = vsel %vm236_vm2, %v909_v6, %v915_v12  ;;  %912 = vrot.lane.b32.xlu0 %v1833_v60, %s1392_s0 }
 0x228   :  { %2660 = vst [vmem:[#allocation26_spill] sm:$0xff] %v2151_v4  ;;  %v921_v43 = vpop.permute.xlu0 %920 }
 0x229   :  { %918 = vrot.lane.b32.xlu1 %v1851_v7, %s1392_s0  ;;  %v2159_v21 = vsel %vm236_vm2, %v915_v12, %v921_v43  ;;  %v1197_v12 = vld [vmem:[%s2597_s4 + $0x8] sm:$0xff] }
 0x22a   :  { %2661 = vst [vmem:[#allocation27_spill] sm:$0xff] %v2159_v21  ;;  %v927_v51 = vpop.permute.xlu1 %926  ;;  %1372 = vmatprep.mubr.msk.f32.mxu0 %vm1204_vm9, %v1197_v12  ;;  %1373 = vmatprep.mubr.msk.f32.mxu1 %vm1204_vm9, %v1197_v12 }
 0x22b   :  { %v2163_v13 = vsel %vm236_vm2, %v921_v43, %v927_v51  ;;  %v2167_v15 = vsel %vm236_vm2, %v927_v51, %v909_v6  ;;  %924 = vrot.lane.b32.xlu0 %v1839_v5, %s1392_s0 }
 0x22c   :  { %2662 = vst [vmem:[#allocation28_spill] sm:$0xff] %v2163_v13  ;;  %2663 = vst [vmem:[#allocation29_spill] sm:$0xff] %v2167_v15  ;;  %v2171_v11 = vpop.permute.xlu0 %778 }
 0x22d   :  { %930 = vrot.lane.b32.xlu1 %v1857_v8, %s1392_s0 }
 0x22e   :  { %v785_v4 = vpop.permute.xlu1 %784 }
 0x22f   :  { %v2181_v43 = vsel %vm158_vm4, %v2171_v11, %v785_v4  ;;  %852 = vrot.lane.b32.xlu0 %v1833_v60, %s1393_s11 }
 0x230   :  { %v791_v6 = vpop.permute.xlu0 %790 }
 0x231   :  { %858 = vrot.lane.b32.xlu1 %v1851_v7, %s1393_s11  ;;  %v2189_v51 = vsel %vm158_vm4, %v785_v4, %v791_v6 }
 0x232   :  { %v797_v13 = vpop.permute.xlu1 %796 }
 0x233   :  { %864 = vrot.lane.b32.xlu0 %v1839_v5, %s1393_s11  ;;  %v1198_v5 = vld [vmem:[%s2598_s5] sm:$0xff] }
 0x234   :  { %v2193_v15 = vpop.permute.xlu0 %718 }
 0x235   :  { %870 = vrot.lane.b32.xlu1 %v1857_v8, %s1393_s11 }
 0x236   :  { %v725_v60 = vpop.permute.xlu1 %724 }
 0x237   :  { %v2200_v12 = vsel %vm121_vm5, %v2193_v15, %v725_v60  ;;  %862 = vrot.lane.b32.xlu0 %v1815_v49, %s1393_s11 }
 0x238   :  { %v2204_v7 = vpop.permute.xlu0 %730 }
 0x239   :  { %868 = vrot.lane.b32.xlu1 %v1825_v30, %s1393_s11  ;;  %v2214_v8 = vsel %vm121_vm5, %v725_v60, %v2204_v7 }
 0x23a   :  { %v2216_v4 = vpop.permute.xlu1 %736 }
 0x23b   :  { %1201 = vperm.xlu0 %1384, %v1198_v5  }
 0x23c   :  { %v2218_v21 = vpop.permute.xlu0 %658 }
 0x23e   :  { %v665_v49 = vpop.permute.xlu1 %664 }
 0x23f   :  { %v2223_v53 = vsel %vm84_vm6, %v2218_v21, %v665_v49 }
 0x240   :  { %v2225_v54 = vpop.permute.xlu0 %670 }
 0x241   :  { %v2230_v30 = vsel %vm84_vm6, %v665_v49, %v2225_v54 }
 0x242   :  { %v2232_v60 = vpop.permute.xlu1 %676 }
 0x244   :  { %v2234_v55 = vpop.permute.xlu0 %598 }
 0x246   :  { %v605_v5 = vpop.permute.xlu1 %604 }
 0x247   :  { %v2239_v52 = vsel %vm47_vm7, %v2234_v55, %v605_v5 }
 0x248   :  { %v2241_v2 = vpop.permute.xlu0 %610 }
 0x249   :  { %v2246_v29 = vsel %vm47_vm7, %v605_v5, %v2241_v2 }
 0x24a   :  { %v2248_v32 = vpop.permute.xlu1 %616 }
 0x24c   :  { %v2250_v49 = vpop.permute.xlu0 %1030 }
 0x24d   :  { %2664 = vst [vmem:[#allocation30_spill] sm:$0xff] %v2250_v49 }
 0x24e   :  { %v2252_v45 = vpop.permute.xlu1 %1036 }
 0x24f   :  { %2665 = vst [vmem:[#allocation31_spill] sm:$0xff] %v2252_v45  ;;  %v2258_v36 = vsel %vm310_vm0, %v2250_v49, %v2252_v45 }
 0x250   :  { %2666 = vst [vmem:[#allocation32_spill] sm:$0xff] %v2258_v36  ;;  %v2260_v37 = vpop.permute.xlu0 %1042 }
 0x251   :  { %2667 = vst [vmem:[#allocation33_spill] sm:$0xff] %v2260_v37 }
 0x252   :  { %v2262_v38 = vpop.permute.xlu1 %1048 }
 0x253   :  { %2668 = vst [vmem:[#allocation34_spill] sm:$0xff] %v2262_v38  ;;  %v2268_v5 = vsel %vm310_vm0, %v2260_v37, %v2262_v38 }
 0x254   :  { %2669 = vst [vmem:[#allocation35_spill] sm:$0xff] %v2268_v5  ;;  %v2270_v35 = vpop.permute.xlu0 %970 }
 0x255   :  { %2670 = vst [vmem:[#allocation36_spill] sm:$0xff] %v2270_v35 }
 0x256   :  { %v2272_v63 = vpop.permute.xlu1 %976 }
 0x257   :  { %2671 = vst [vmem:[#allocation37_spill] sm:$0xff] %v2272_v63  ;;  %v2278_v16 = vsel %vm273_vm1, %v2270_v35, %v2272_v63 }
 0x258   :  { %2672 = vst [vmem:[#allocation38_spill] sm:$0xff] %v2278_v16  ;;  %v2280_v57 = vpop.permute.xlu0 %982 }
 0x259   :  { %2673 = vst [vmem:[#allocation39_spill] sm:$0xff] %v2280_v57 }
 0x25a   :  { %v2282_v62 = vpop.permute.xlu1 %988 }
 0x25b   :  { %2674 = vst [vmem:[#allocation40_spill] sm:$0xff] %v2282_v62  ;;  %v2288_v36 = vsel %vm273_vm1, %v2280_v57, %v2282_v62 }
 0x25c   :  { %2675 = vst [vmem:[#allocation41_spill] sm:$0xff] %v2288_v36  ;;  %v2290_v5 = vpop.permute.xlu0 %910 }
 0x25d   :  { %2676 = vst [vmem:[#allocation42_spill] sm:$0xff] %v2290_v5 }
 0x25e   :  { %v2292_v38 = vpop.permute.xlu1 %916 }
 0x25f   :  { %2677 = vst [vmem:[#allocation43_spill] sm:$0xff] %v2292_v38  ;;  %v2298_v35 = vsel %vm236_vm2, %v2290_v5, %v2292_v38 }
 0x260   :  { %2678 = vst [vmem:[#allocation44_spill] sm:$0xff] %v2298_v35  ;;  %v2300_v16 = vpop.permute.xlu0 %922 }
 0x261   :  { %2679 = vst [vmem:[#allocation45_spill] sm:$0xff] %v2300_v16 }
 0x262   :  { %v2302_v63 = vpop.permute.xlu1 %928 }
 0x263   :  { %2680 = vst [vmem:[#allocation46_spill] sm:$0xff] %v2302_v63  ;;  %v2308_v62 = vsel %vm236_vm2, %v2300_v16, %v2302_v63 }
 0x264   :  { %2681 = vst [vmem:[#allocation47_spill] sm:$0xff] %v2308_v62  ;;  %v2310_v36 = vpop.permute.xlu0 %850  ;;  %v801_v62 = vsel %vm158_vm4, %v791_v6, %v797_v13 }
 0x265   :  { %2682 = vst [vmem:[#allocation48_spill] sm:$0xff] %v2310_v36  ;;  %v810_v36 = vsel %vm158_vm4, %v797_v13, %v2171_v11  ;;  %v819_v11 = vmul.f32 %v801_v62, %v1672_v41 }
 0x266   :  { %v2312_v57 = vpop.permute.xlu1 %856  ;;  %v816_v3 = vmul.f32 %v810_v36, %v1666_v39  ;;  %v815_v36 = vmul.f32 %v2013_v34, %v1672_v41 }
 0x267   :  { %2683 = vst [vmem:[#allocation49_spill] sm:$0xff] %v2312_v57 }
 0x268   :  { %v781_v49 = vpop.permute.xlu0 %780 }
 0x26a   :  { %v787_v45 = vpop.permute.xlu1 %786 }
 0x26b   :  { %v808_v5 = vsel %vm158_vm4, %v781_v49, %v787_v45 }
 0x26c   :  { %v821_v35 = vmul.f32 %v808_v5, %v1660_v26 }
 0x26d   :  { %v793_v38 = vpop.permute.xlu0 %792 }
 0x26e   :  { %1216 = vmatprep.subr.mxu0 %v821_v35  ;;  %v805_v37 = vsel %vm158_vm4, %v787_v45, %v793_v38  ;;  %v817_v45 = vmul.f32 %v2181_v43, %v1660_v26 }
 0x26f   :  { %v799_v17 = vpop.permute.xlu1 %798  ;;  %v822_v6 = vmul.f32 %v805_v37, %v1675_v42  ;;  %v812_v37 = vmul.f32 %v2017_v31, %v1666_v39 }
 0x270   :  { %v802_v57 = vsel %vm158_vm4, %v793_v38, %v799_v17  ;;  %v811_v63 = vsel %vm158_vm4, %v799_v17, %v781_v49  ;;  %v813_v38 = vmul.f32 %v1998_v46, %v1660_v26  ;;  %v818_v17 = vmul.f32 %v2189_v51, %v1675_v42 }
 0x271   :  { %v820_v5 = vmul.f32 %v811_v63, %v1666_v39  ;;  %v823_v35 = vmul.f32 %v802_v57, %v1672_v41  ;;  %v721_v16 = vpop.permute.xlu0 %720  ;;  %v814_v26 = vmul.f32 %v2007_v50, %v1675_v42  ;;  %v741_v46 = vsel %vm121_vm5, %v2204_v7, %v2216_v4 }
 0x272   :  { %v750_v41 = vsel %vm121_vm5, %v2216_v4, %v2193_v15  ;;  %v757_v51 = vmul.f32 %v2200_v12, %v1691_v48  ;;  %v759_v4 = vmul.f32 %v741_v46, %v1700_v58  ;;  %v752_v12 = vmul.f32 %v2047_v25, %v1696_v56 }
 0x273   :  { %v727_v13 = vpop.permute.xlu1 %726  ;;  %1217 = vmatpush1.msra.mxu0 %v820_v5  ;;  %1287 = vmatprep.subr.mxu1 %v823_v35  ;;  %v756_v15 = vmul.f32 %v750_v41, %v1696_v56  ;;  %v758_v5 = vmul.f32 %v2214_v8, %v1703_v59  ;;  %v637_v46 = vmul.f32 %v2239_v52, %v1743_v44 }
 0x274   :  { %v748_v57 = vsel %vm121_vm5, %v721_v16, %v727_v13  ;;  %1218 = vmatprep.subr.mxu0 %v817_v45  ;;  %1288 = vmatpush1.msra.mxu1 %v822_v6  ;;  %v755_v45 = vmul.f32 %v2043_v40, %v1700_v58  ;;  %v633_v41 = vmul.f32 %v2079_v33, %v1743_v44  ;;  %v2686_v33 = vld [vmem:[#allocation33_spill] sm:$0xff] }
 0x275   :  { %v761_v62 = vmul.f32 %v748_v57, %v1691_v48  ;;  %1219 = vmatpush1.msra.mxu0 %v816_v3  ;;  %1289 = vmatprep.subr.mxu1 %v819_v11  ;;  %v733_v63 = vpop.permute.xlu0 %732  ;;  %v693_v57 = vmul.f32 %v2055_v9, %v1717_v14  ;;  %v621_v9 = vsel %vm47_vm7, %v2241_v2, %v2248_v32 }
 0x276   :  { %1220 = vmatprep.subr.mxu0 %v813_v38  ;;  %1290 = vmatpush1.msra.mxu1 %v818_v17  ;;  %v745_v39 = vsel %vm121_vm5, %v727_v13, %v733_v63  ;;  %v697_v13 = vmul.f32 %v2223_v53, %v1717_v14  ;;  %v692_v53 = vmul.f32 %v2071_v27, %v1722_v20 }
 0x277   :  { %v739_v31 = vpop.permute.xlu1 %738  ;;  %1221 = vmatpush1.msra.mxu0 %v812_v37  ;;  %1291 = vmatprep.subr.mxu1 %v815_v36  ;;  %v762_v7 = vmul.f32 %v745_v39, %v1703_v59  ;;  %v698_v37 = vmul.f32 %v2230_v30, %v1729_v23  ;;  %v632_v52 = vmul.f32 %v2095_v28, %v1749_v47 }
 0x278   :  { %v742_v42 = vsel %vm121_vm5, %v733_v63, %v739_v31  ;;  %v751_v50 = vsel %vm121_vm5, %v739_v31, %v721_v16  ;;  %1222 = vmatprep.subr.mxu0 %v761_v62  ;;  %1292 = vmatpush1.msra.mxu1 %v814_v26  ;;  %v753_v16 = vmul.f32 %v2031_v61, %v1691_v48 }
 0x279   :  { %v760_v34 = vmul.f32 %v751_v50, %v1696_v56  ;;  %v763_v3 = vmul.f32 %v742_v42, %v1700_v58  ;;  %v661_v43 = vpop.permute.xlu0 %660  ;;  %v754_v48 = vmul.f32 %v2039_v19, %v1703_v59  ;;  %v681_v61 = vsel %vm84_vm6, %v2225_v54, %v2232_v60  ;;  %v2684_v50 = vld [vmem:[#allocation17_spill] sm:$0xff] }
 0x27a   :  { %v690_v58 = vsel %vm84_vm6, %v2232_v60, %v2218_v21  ;;  %v699_v60 = vmul.f32 %v681_v61, %v1726_v22  ;;  %v695_v62 = vmul.f32 %v2067_v24, %v1726_v22  ;;  %v638_v42 = vmul.f32 %v2246_v29, %v1755_v0 }
 0x27b   :  { %v667_v49 = vpop.permute.xlu1 %666  ;;  %1223 = vmatpush1.msra.mxu0 %v760_v34  ;;  %1293 = vmatprep.subr.mxu1 %v763_v3  ;;  %v696_v21 = vmul.f32 %v690_v58, %v1722_v20  ;;  %v635_v34 = vmul.f32 %v2684_v50, %v1752_v1 }
 0x27c   :  { %v688_v35 = vsel %vm84_vm6, %v661_v43, %v667_v49  ;;  %1224 = vmatprep.subr.mxu0 %v757_v51  ;;  %1294 = vmatpush1.msra.mxu1 %v762_v7  ;;  %v2685_v51 = vld [vmem:[#allocation16_spill] sm:$0xff]  ;;  %v2687_v7 = vld [vmem:[#allocation31_spill] sm:$0xff] }
 0x27d   :  { %v701_v6 = vmul.f32 %v688_v35, %v1717_v14  ;;  %1225 = vmatpush1.msra.mxu0 %v756_v15  ;;  %1295 = vmatprep.subr.mxu1 %v759_v4  ;;  %v673_v11 = vpop.permute.xlu0 %672  ;;  %v694_v14 = vmul.f32 %v2063_v18, %v1729_v23  ;;  %v1056_v29 = vsel %vm310_vm0, %v2687_v7, %v2686_v33  ;;  %v2688_v4 = vld [vmem:[#allocation30_spill] sm:$0xff]  ;;  %v2707_v7 = vld [vmem:[#allocation41_spill] sm:$0xff] }
 0x27e   :  { %1226 = vmatprep.subr.mxu0 %v753_v16  ;;  %1296 = vmatpush1.msra.mxu1 %v758_v5  ;;  %v685_v56 = vsel %vm84_vm6, %v667_v49, %v673_v11  ;;  %v1387_v16 = vld [vmem:[%s2594_s1 + $0x20] ss:$0 sm:$0xff] }
 0x27f   :  { %v679_v25 = vpop.permute.xlu1 %678  ;;  %1227 = vmatpush1.msra.mxu0 %v752_v12  ;;  %1297 = vmatprep.subr.mxu1 %v755_v45  ;;  %v702_v38 = vmul.f32 %v685_v56, %v1729_v23 }
 0x280   :  { %v682_v59 = vsel %vm84_vm6, %v673_v11, %v679_v25  ;;  %v691_v19 = vsel %vm84_vm6, %v679_v25, %v661_v43  ;;  %1228 = vmatprep.subr.mxu0 %v701_v6  ;;  %1298 = vmatpush1.msra.mxu1 %v754_v48  ;;  %v1388_v6 = vld [vmem:[%s2594_s1 + $0x30] ss:$0 sm:$0xff]  ;;  %v1389_v48 = vld [vmem:[%s2594_s1 + $0x38] ss:$0 sm:$0xff]  ;;  %v2690_v25 = vld [vmem:[#allocation32_spill] sm:$0xff] }
 0x281   :  { %v700_v54 = vmul.f32 %v691_v19, %v1722_v20  ;;  %v703_v40 = vmul.f32 %v682_v59, %v1726_v22  ;;  %v601_v8 = vpop.permute.xlu0 %600  ;;  %v630_v22 = vsel %vm47_vm7, %v2248_v32, %v2234_v55  ;;  %v639_v32 = vmul.f32 %v621_v9, %v1752_v1  ;;  %v2691_v59 = vld [vmem:[#allocation19_spill] sm:$0xff]  ;;  %v2698_v9 = vld [vmem:[#allocation4_spill] sm:$0xff] }
 0x282   :  { %v636_v55 = vmul.f32 %v630_v22, %v1749_v47  ;;  %v1068_v58 = vmul.f32 %v1387_v16, %v2690_v25  ;;  %v2699_v22 = vld [vmem:[#allocation36_spill] sm:$0xff] }
 0x283   :  { %v607_v17 = vpop.permute.xlu1 %606  ;;  %1229 = vmatpush1.msra.mxu0 %v700_v54  ;;  %1299 = vmatprep.subr.mxu1 %v703_v40 }
 0x284   :  { %v628_v36 = vsel %vm47_vm7, %v601_v8, %v607_v17  ;;  %1230 = vmatprep.subr.mxu0 %v697_v13  ;;  %1300 = vmatpush1.msra.mxu1 %v702_v38  ;;  %v2693_v38 = vld [vmem:[#allocation35_spill] sm:$0xff] }
 0x285   :  { %v641_v63 = vmul.f32 %v628_v36, %v1743_v44  ;;  %1231 = vmatpush1.msra.mxu0 %v696_v21  ;;  %1301 = vmatprep.subr.mxu1 %v699_v60  ;;  %v613_v26 = vpop.permute.xlu0 %612  ;;  %v634_v44 = vmul.f32 %v2685_v51, %v1755_v0  ;;  %v1070_v21 = vmul.f32 %v1388_v6, %v2693_v38  ;;  %v2694_v60 = vld [vmem:[#allocation21_spill] sm:$0xff]  ;;  %v2695_v36 = vld [vmem:[#allocation20_spill] sm:$0xff] }
 0x286   :  { %1232 = vmatprep.subr.mxu0 %v693_v57  ;;  %1302 = vmatpush1.msra.mxu1 %v698_v37  ;;  %v625_v20 = vsel %vm47_vm7, %v607_v17, %v613_v26  ;;  %v1067_v17 = vmul.f32 %v1389_v48, %v2694_v60 }
 0x287   :  { %v619_v27 = vpop.permute.xlu1 %618  ;;  %1233 = vmatpush1.msra.mxu0 %v692_v53  ;;  %1303 = vmatprep.subr.mxu1 %v695_v62  ;;  %v642_v39 = vmul.f32 %v625_v20, %v1755_v0  ;;  %v2689_v0 = vld [vmem:[#allocation34_spill] sm:$0xff]  ;;  %v1066_v53 = vmul.f32 %v1388_v6, %v2695_v36  ;;  %v2696_v62 = vld [vmem:[#allocation39_spill] sm:$0xff] }
 0x288   :  { %v622_v23 = vsel %vm47_vm7, %v613_v26, %v619_v27  ;;  %v631_v18 = vsel %vm47_vm7, %v619_v27, %v601_v8  ;;  %1234 = vmatprep.subr.mxu0 %v641_v63  ;;  %1304 = vmatpush1.msra.mxu1 %v694_v14  ;;  %v1062_v49 = vsel %vm310_vm0, %v2689_v0, %v2688_v4  ;;  %v2692_v8 = vld [vmem:[#allocation18_spill] sm:$0xff]  ;;  %v2697_v63 = vld [vmem:[#allocation37_spill] sm:$0xff]  ;;  %v2709_v4 = vld [vmem:[#allocation24_spill] sm:$0xff] }
 0x289   :  { %v640_v24 = vmul.f32 %v631_v18, %v1749_v47  ;;  %v643_v2 = vmul.f32 %v622_v23, %v1752_v1  ;;  %v1033_v30 = vpop.permute.xlu0 %1032  ;;  %v1386_v1 = vld [vmem:[%s2594_s1 + $0x28] ss:$0 sm:$0xff]  ;;  %v1071_v54 = vmul.f32 %v1389_v48, %v1062_v49  ;;  %v1064_v13 = vmul.f32 %v1387_v16, %v2692_v8  ;;  %v2700_v23 = vld [vmem:[#allocation40_spill] sm:$0xff] }
 0x28a   :  { %v1069_v45 = vmul.f32 %v1386_v1, %v1056_v29  ;;  %v1065_v19 = vmul.f32 %v1386_v1, %v2691_v59  ;;  %v996_v26 = vsel %vm273_vm1, %v2697_v63, %v2696_v62  ;;  %v1002_v18 = vsel %vm273_vm1, %v2700_v23, %v2699_v22  ;;  %v2710_v49 = vld [vmem:[#allocation45_spill] sm:$0xff]  ;;  %v2721_v63 = vld [vmem:[#allocation47_spill] sm:$0xff]  ;;  %v2723_v22 = vld [vmem:[#allocation28_spill] sm:$0xff] }
 0x28b   :  { %v1039_v31 = vpop.permute.xlu1 %1038  ;;  %1235 = vmatpush1.msra.mxu0 %v640_v24  ;;  %1305 = vmatprep.subr.mxu1 %v643_v2  ;;  %v2701_v24 = vld [vmem:[#allocation7_spill] sm:$0xff]  ;;  %v2717_v8 = vld [vmem:[#allocation9_spill] sm:$0xff] }
 0x28c   :  { %1236 = vmatprep.subr.mxu0 %v637_v46  ;;  %1306 = vmatpush1.msra.mxu1 %v642_v39  ;;  %v1060_v3 = vsel %vm310_vm0, %v1033_v30, %v1039_v31  ;;  %v1009_v39 = vmul.f32 %v996_v26, %v2698_v9 }
 0x28d   :  { %1237 = vmatpush1.msra.mxu0 %v636_v55  ;;  %1307 = vmatprep.subr.mxu1 %v639_v32  ;;  %v1045_v43 = vpop.permute.xlu0 %1044  ;;  %v1072_v5 = vmul.f32 %v1387_v16, %v1060_v3  ;;  %v2702_v55 = vld [vmem:[#allocation6_spill] sm:$0xff]  ;;  %v2711_v16 = vld [vmem:[#allocation43_spill] sm:$0xff] }
 0x28e   :  { %v1057_v47 = vsel %vm310_vm0, %v1039_v31, %v1045_v43  ;;  %1238 = vmatprep.subr.mxu0 %v633_v41  ;;  %1308 = vmatpush1.msra.mxu1 %v638_v42  ;;  %v2703_v31 = vld [vmem:[#allocation5_spill] sm:$0xff]  ;;  %v1010_v29 = vmul.f32 %v2707_v7, %v2702_v55  ;;  %v1006_v0 = vmul.f32 %v2709_v4, %v2702_v55 }
 0x28f   :  { %v1073_v28 = vmul.f32 %v1386_v1, %v1057_v47  ;;  %v1051_v15 = vpop.permute.xlu1 %1050  ;;  %1239 = vmatpush1.msra.mxu0 %v632_v52  ;;  %1309 = vmatprep.subr.mxu1 %v635_v34  ;;  %v2704_v52 = vld [vmem:[#allocation38_spill] sm:$0xff]  ;;  %v2705_v34 = vld [vmem:[#allocation23_spill] sm:$0xff]  ;;  %v2708_v47 = vld [vmem:[#allocation25_spill] sm:$0xff] }
 0x290   :  { %v1054_v35 = vsel %vm310_vm0, %v1045_v43, %v1051_v15  ;;  %v1063_v12 = vsel %vm310_vm0, %v1051_v15, %v1033_v30  ;;  %1310 = vmatpush1.msra.mxu1 %v634_v44  ;;  %v1008_v50 = vmul.f32 %v2704_v52, %v2701_v24  ;;  %v1005_v3 = vmul.f32 %v2705_v34, %v2698_v9  ;;  %v2706_v44 = vld [vmem:[#allocation22_spill] sm:$0xff]  ;;  %v2729_v34 = vld [vmem:[#allocation13_spill] sm:$0xff] }
 0x291   :  { %v1074_v11 = vmul.f32 %v1388_v6, %v1054_v35  ;;  %v1075_v61 = vmul.f32 %v1389_v48, %v1063_v12  ;;  %1250 = vmatprep.subr.mxu0 %v1073_v28  ;;  %v973_v56 = vpop.permute.xlu0 %972  ;;  %v1011_v43 = vmul.f32 %v1002_v18, %v2703_v31  ;;  %v1004_v33 = vmul.f32 %v2706_v44, %v2701_v24  ;;  %v2712_v12 = vld [vmem:[#allocation8_spill] sm:$0xff]  ;;  %v2714_v48 = vld [vmem:[#allocation46_spill] sm:$0xff] }
 0x292   :  { %1251 = vmatpush2.msra.mxu0 %v1072_v5  ;;  %v1007_v1 = vmul.f32 %v2708_v47, %v2703_v31  ;;  %v936_v5 = vsel %vm236_vm2, %v2711_v16, %v2710_v49  ;;  %v2728_v52 = vld [vmem:[#allocation14_spill] sm:$0xff] }
 0x293   :  { %v979_v40 = vpop.permute.xlu1 %978  ;;  %1252 = vmatprep.subr.mxu0 %v1069_v45  ;;  %1321 = vmatprep.subr.mxu1 %v1075_v61 }
 0x294   :  { %1253 = vmatpush2.msra.mxu0 %v1068_v58  ;;  %1322 = vmatpush2.msra.mxu1 %v1074_v11  ;;  %v1000_v57 = vsel %vm273_vm1, %v973_v56, %v979_v40  ;;  %v2713_v11 = vld [vmem:[#allocation42_spill] sm:$0xff] }
 0x295   :  { %1254 = vmatprep.subr.mxu0 %v1065_v19  ;;  %1323 = vmatprep.subr.mxu1 %v1071_v54  ;;  %v985_v37 = vpop.permute.xlu0 %984  ;;  %v1012_v2 = vmul.f32 %v1000_v57, %v2701_v24  ;;  %v942_v61 = vsel %vm236_vm2, %v2714_v48, %v2713_v11  ;;  %v949_v19 = vmul.f32 %v936_v5, %v2712_v12  ;;  %v2716_v54 = vld [vmem:[#allocation10_spill] sm:$0xff]  ;;  %v2724_v24 = vld [vmem:[#allocation12_spill] sm:$0xff] }
 0x296   :  { %v997_v14 = vsel %vm273_vm1, %v979_v40, %v985_v37  ;;  %1255 = vmatpush2.msra.mxu0 %v1064_v13  ;;  %1324 = vmatpush2.msra.mxu1 %v1070_v21  ;;  %v2718_v21 = vld [vmem:[#allocation44_spill] sm:$0xff]  ;;  %v950_v26 = vmul.f32 %v2721_v63, %v2716_v54  ;;  %v946_v23 = vmul.f32 %v2723_v22, %v2716_v54 }
 0x297   :  { %v1013_v20 = vmul.f32 %v997_v14, %v2698_v9  ;;  %v991_v27 = vpop.permute.xlu1 %990  ;;  %1325 = vmatprep.subr.mxu1 %v1067_v17  ;;  %v2719_v17 = vld [vmem:[#allocation27_spill] sm:$0xff]  ;;  %v2722_v14 = vld [vmem:[#allocation29_spill] sm:$0xff] }
 0x298   :  { %v994_v30 = vsel %vm273_vm1, %v985_v37, %v991_v27  ;;  %v1003_v46 = vsel %vm273_vm1, %v991_v27, %v973_v56  ;;  %1326 = vmatpush2.msra.mxu1 %v1066_v53  ;;  %v2715_v56 = vld [vmem:[#allocation11_spill] sm:$0xff]  ;;  %v945_v57 = vmul.f32 %v2719_v17, %v2712_v12  ;;  %v951_v37 = vmul.f32 %v942_v61, %v2717_v8  ;;  %v2720_v53 = vld [vmem:[#allocation26_spill] sm:$0xff] }
 0x299   :  { %v1014_v32 = vmul.f32 %v994_v30, %v2702_v55  ;;  %v1015_v41 = vmul.f32 %v1003_v46, %v2703_v31  ;;  %1256 = vmatprep.subr.mxu0 %v1013_v20  ;;  %v913_v42 = vpop.permute.xlu0 %912  ;;  %v948_v60 = vmul.f32 %v2718_v21, %v2715_v56  ;;  %v944_v62 = vmul.f32 %v2720_v53, %v2715_v56  ;;  %v2725_v46 = vld [vmem:[#allocation15_spill] sm:$0xff]  ;;  %v2726_v31 = vld [vmem:[#allocation49_spill] sm:$0xff] }
 0x29a   :  { %1257 = vmatpush2.msra.mxu0 %v1012_v2  ;;  %v947_v9 = vmul.f32 %v2722_v14, %v2717_v8 }
 0x29b   :  { %v919_v51 = vpop.permute.xlu1 %918  ;;  %1258 = vmatprep.subr.mxu0 %v1009_v39  ;;  %1327 = vmatprep.subr.mxu1 %v1015_v41  ;;  %v2727_v41 = vld [vmem:[#allocation48_spill] sm:$0xff] }
 0x29c   :  { %1259 = vmatpush2.msra.mxu0 %v1008_v50  ;;  %1328 = vmatpush2.msra.mxu1 %v1014_v32  ;;  %v940_v28 = vsel %vm236_vm2, %v913_v42, %v919_v51 }
 0x29d   :  { %1260 = vmatprep.subr.mxu0 %v1005_v3  ;;  %1329 = vmatprep.subr.mxu1 %v1011_v43  ;;  %v925_v15 = vpop.permute.xlu0 %924  ;;  %v952_v25 = vmul.f32 %v940_v28, %v2715_v56 }
 0x29e   :  { %v937_v35 = vsel %vm236_vm2, %v919_v51, %v925_v15  ;;  %1261 = vmatpush2.msra.mxu0 %v1004_v33  ;;  %1330 = vmatpush2.msra.mxu1 %v1010_v29 }
 0x29f   :  { %v953_v45 = vmul.f32 %v937_v35, %v2712_v12  ;;  %v931_v6 = vpop.permute.xlu1 %930  ;;  %1331 = vmatprep.subr.mxu1 %v1007_v1  ;;  %v1196_v1 = vld [vmem:[%s2597_s4] sm:$0xff] }
 0x2a0   :  { %v934_v58 = vsel %vm236_vm2, %v925_v15, %v931_v6  ;;  %v943_v59 = vsel %vm236_vm2, %v931_v6, %v913_v42  ;;  %1332 = vmatpush2.msra.mxu1 %v1006_v0  ;;  %v879_v42 = vsel %vm199_vm3, %v2727_v41, %v2726_v31 }
 0x2a1   :  { %v954_v40 = vmul.f32 %v934_v58, %v2716_v54  ;;  %v955_v13 = vmul.f32 %v943_v59, %v2717_v8  ;;  %1262 = vmatprep.subr.mxu0 %v953_v45  ;;  %v853_v38 = vpop.permute.xlu0 %852  ;;  %v888_v7 = vmul.f32 %v879_v42, %v2725_v46 }
 0x2a2   :  { %1263 = vmatpush2.msra.mxu0 %v952_v25 }
 0x2a3   :  { %v859_v36 = vpop.permute.xlu1 %858  ;;  %1264 = vmatprep.subr.mxu0 %v949_v19  ;;  %1333 = vmatprep.subr.mxu1 %v955_v13 }
 0x2a4   :  { %1265 = vmatpush2.msra.mxu0 %v948_v60  ;;  %1334 = vmatpush2.msra.mxu1 %v954_v40  ;;  %v880_v20 = vsel %vm199_vm3, %v853_v38, %v859_v36 }
 0x2a5   :  { %1266 = vmatprep.subr.mxu0 %v945_v57  ;;  %1335 = vmatprep.subr.mxu1 %v951_v37  ;;  %v865_v27 = vpop.permute.xlu0 %864  ;;  %v892_v39 = vmul.f32 %v880_v20, %v2725_v46 }
 0x2a6   :  { %v877_v18 = vsel %vm199_vm3, %v859_v36, %v865_v27  ;;  %1267 = vmatpush2.msra.mxu0 %v944_v62  ;;  %1336 = vmatpush2.msra.mxu1 %v950_v26 }
 0x2a7   :  { %v893_v2 = vmul.f32 %v877_v18, %v2724_v24  ;;  %v871_v30 = vpop.permute.xlu1 %870  ;;  %1337 = vmatprep.subr.mxu1 %v947_v9 }
 0x2a8   :  { %v874_v55 = vsel %vm199_vm3, %v865_v27, %v871_v30  ;;  %v883_v32 = vsel %vm199_vm3, %v871_v30, %v853_v38  ;;  %1338 = vmatpush2.msra.mxu1 %v946_v23 }
 0x2a9   :  { %v894_v50 = vmul.f32 %v874_v55, %v2728_v52  ;;  %v895_v3 = vmul.f32 %v883_v32, %v2729_v34  ;;  %1268 = vmatprep.subr.mxu0 %v893_v2  ;;  %v863_v43 = vpop.permute.xlu0 %862 }
 0x2aa   :  { %v876_v51 = vsel %vm199_vm3, %v2726_v31, %v863_v43  ;;  %1269 = vmatpush2.msra.mxu0 %v892_v39 }
 0x2ab   :  { %v889_v44 = vmul.f32 %v876_v51, %v2724_v24  ;;  %v869_v33 = vpop.permute.xlu1 %868  ;;  %1339 = vmatprep.subr.mxu1 %v895_v3 }
 0x2ac   :  { %v873_v29 = vsel %vm199_vm3, %v863_v43, %v869_v33  ;;  %v882_v47 = vsel %vm199_vm3, %v869_v33, %v2727_v41  ;;  %1340 = vmatpush2.msra.mxu1 %v894_v50 }
 0x2ad   :  { %v890_v28 = vmul.f32 %v873_v29, %v2728_v52  ;;  %v891_v15 = vmul.f32 %v882_v47, %v2729_v34  ;;  %1270 = vmatprep.subr.mxu0 %v889_v44 }
 0x2ae   :  { %1271 = vmatpush2.msra.mxu0 %v888_v7 }
 0x2af   :  { %1273 = vmatmul.mubr.f32.vlgmr.msra.gmra.mxu0 %v1196_v1  ;;  %1341 = vmatprep.subr.mxu1 %v891_v15 }
 0x2b0   :  { %1342 = vmatpush2.msra.mxu1 %v890_v28 }
 0x2b1   :  { %1344 = vmatmul.mubr.f32.vlgmr.msra.gmra.mxu1 %v1196_v1 }
 0x2b6   :  { %v1202_v4 = vpop.permute.xlu0 %1201 }
 0x36f   :  { %v1274_v0 = vpop.f32.mrf.mxu0 }
 0x370   :  { %v1275_v49 = vadd.f32 %v1274_v0, %v1202_v4 }
 0x371   :  { %v1276_v10 = vpop.f32.mrf.mxu0  ;;  %v1345_v16 = vpop.f32.mrf.mxu1 }
 0x372   :  { %1350 = vst [vmem:[%s2599_s7] sm:$0xff] %v1275_v49  ;;  %v1277_v5 = vadd.f32 %v1276_v10, %v1202_v4  ;;  %v1346_v35 = vadd.f32 %v1345_v16, %v1202_v4 }
 0x373   :  { %v1347_v12 = vpop.f32.mrf.mxu1 }
 0x374   :  { %1351 = vst [vmem:[%s2599_s7 + $0x8] sm:$0xff] %v1277_v5  ;;  %1352 = vst [vmem:[%s2599_s7 + $0x10] sm:$0xff] %v1346_v35  ;;  %v1348_v45 = vadd.f32 %v1347_v12, %v1202_v4 }
 0x376   :  { %1353 = vst [vmem:[%s2599_s7 + $0x18] sm:$0xff] %v1348_v45 }

</bundles_post_ra>
